<compile_context>
chip_gen: v7x
topology: tpu7x:2x2x1
jax: 0.10.0
libtpu: 0.0.40
codegen_flags: <defaults>
</compile_context>

<pallas_src>
import functools

import jax
import jax.numpy as jnp
from jax.experimental import pallas as pl
from jax.experimental.pallas import tpu as pltpu


# ---------------------------------------------------------------------------
# Pallas kernel: SED head (block_b batch elements folded into the MXU M axis)
# ---------------------------------------------------------------------------
def sed_head_kernel(x_ref, w1_ref, b1_ref, watt_ref, batt_ref, wcla_ref,
                    bcla_ref, clip_ref, logit_ref, seg_logit_ref):
    bb, t, c = x_ref.shape
    kp = batt_ref.shape[-1]
    rows = bb * t

    # bf16 activations -> f32 for the pooling; fold batch & time into rows.
    x = x_ref[...].astype(jnp.float32).reshape(rows, c)

    # Narrow (rows, 1) time-position masks (row r holds time step r % t),
    # applied arithmetically.  They also stop the sublane roll wrap-around
    # from leaking across batch boundaries.
    t_ids = jax.lax.broadcasted_iota(jnp.int32, (rows, 1), 0) % t
    first_f = (t_ids == 0).astype(jnp.float32)       # 1.0 on the first step
    last_f = (t_ids == t - 1).astype(jnp.float32)    # 1.0 on the last step

    prev = pltpu.roll(x, shift=1, axis=0)            # row r-1 (wrapped)
    nxt = pltpu.roll(x, shift=rows - 1, axis=0)      # row r+1 (wrapped)

    big = jnp.float32(1e30)
    # max_pool1d(kernel=3, stride=1, padding=1): out-of-range neighbours -> -big
    x1 = jnp.maximum(jnp.maximum(prev - first_f * big, x), nxt - last_f * big)
    # avg_pool1d(kernel=3, stride=1, padding=1), count_include_pad=True
    x2 = (prev * (1.0 - first_f) + x + nxt * (1.0 - last_f)) * (1.0 / 3.0)
    xp = x1 + x2                                     # (rows, C) f32

    mm = w1_ref.dtype                                # matmul operand dtype

    # fc1 + ReLU (weights pre-transposed in the wrapper: y = xp @ W1^T + b1).
    y = jnp.dot(xp.astype(mm), w1_ref[...],
                preferred_element_type=jnp.float32) + b1_ref[...]
    y = jnp.maximum(y, 0.0).astype(mm)               # (rows, C)

    # AttBlockV2: the 1x1 convs are matmuls over the folded (rows, C) tensor.
    att_logit = jnp.dot(y, watt_ref[...],
                        preferred_element_type=jnp.float32) + batt_ref[...]
    att = jnp.tanh(att_logit).reshape(bb, t, kp)
    cla_logit = (jnp.dot(y, wcla_ref[...],
                         preferred_element_type=jnp.float32)
                 + bcla_ref[...]).reshape(bb, t, kp)
    cla = jax.nn.sigmoid(cla_logit)

    # Softmax over time (torch dim=-1 on (B, K, T)), per batch / per class.
    # TODO(synk): on v6e/v7x the tanh/exp/sigmoid could run in bf16 on the EUP
    #             at ~2x rate; kept f32 here so the same kernel is v5e-safe.
    att_max = jnp.max(att, axis=1, keepdims=True)
    ex = jnp.exp(att - att_max)
    inv = pl.reciprocal(jnp.sum(ex, axis=1, keepdims=True), approx=True)
    norm_att = ex * inv                              # (bb, t, kp)

    clip_ref[...] = jnp.sum(norm_att * cla, axis=1)            # (bb, kp) f32
    logit_ref[...] = jnp.sum(norm_att * cla_logit, axis=1)     # (bb, kp) f32
    seg_logit_ref[...] = cla_logit.astype(seg_logit_ref.dtype)  # (bb, t, kp)


# ---------------------------------------------------------------------------
# Wrapper: layout prep (channels-last, pre-transpose, class-dim pad) + call
# ---------------------------------------------------------------------------
def _round_up(n, m):
    return (n + m - 1) // m * m


def _pad2(a, r, c):
    return jnp.pad(a, ((0, r - a.shape[0]), (0, c - a.shape[1])))


def _pick_block_b(batch, t, max_rows=2048):
    """Largest batch block with rows = block_b*T <= max_rows, preferring
    sublane-aligned blocks (multiple of 8, or the whole batch) and a grid of
    length >= 2 so the parallel axis can still split across v7x's two TCs."""
    cap = max(max_rows // max(t, 1), 1)
    divs = [d for d in range(1, batch + 1) if batch % d == 0]
    aligned = [d for d in divs if d <= cap and (d % 8 == 0 or d == batch)]
    if aligned:
        multi = [d for d in aligned if batch // d >= 2]
        return max(multi) if multi else max(aligned)
    fits = [d for d in divs if d <= cap]
    return max(fits) if fits else 1


def _vmem_limit_bytes(block_b, t, c, kp):
    """Right-sized VMEM limit from the actual block sizes (v7x has 64 MiB)."""
    rows = block_b * t
    pipelined = 2 * (rows * c * 2              # x block (bf16), double-buffered
                     + rows * kp * 2           # seg_logit block (bf16)
                     + 2 * block_b * kp * 4)   # clip + logit blocks (f32)
    weights = 2 * ((c * c + 2 * c * kp) * 2 + (c + 2 * kp) * 4)
    temps = 12 * rows * max(c, kp) * 4         # in-kernel f32 intermediates
    return int(min(max(pipelined + weights + temps + (4 << 20), 32 << 20),
                   64 << 20))


def sed_head(feat, params, *, block_b=None, weight_dtype=jnp.bfloat16,
             act_dtype=jnp.bfloat16, vmem_limit_bytes=None):
    """feat: (B, C, Fr, T) float32 encoder features."""
    B, C, Fr, T = feat.shape
    K = params["att_w"].shape[0]
    Kp = _round_up(K, 128)
    # The in-kernel (bb, T, C) <-> (bb*T, C) folds are layout-trivial only
    # when T is sublane-aligned; pad time upstream otherwise.
    assert T % 8 == 0, "T must be a multiple of 8"

    # Frequency mean hoisted out of the kernel (cuts input DMA by Fr x),
    # channels-last, activations DMA'd in bf16 (halves input bytes).  No Cp
    # padding of x: its block's trailing dims equal the full array dims, so
    # the standalone pad copy from the previous version is gone.
    x = jnp.transpose(jnp.mean(feat, axis=2), (0, 2, 1)).astype(act_dtype)

    # One-time weight prep: pre-transpose, zero-pad only the class dim to a
    # lane-dense Kp, carry matmul operands in bf16 (biases stay f32 and are
    # added after the f32 MXU accumulation).
    w1t = params["fc1_w"].T.astype(weight_dtype)                   # (C, C)
    b1 = params["fc1_b"].reshape(1, C).astype(jnp.float32)
    wattT = _pad2(params["att_w"].T, C, Kp).astype(weight_dtype)   # (C, Kp)
    batt = _pad2(params["att_b"].reshape(1, K), 1, Kp)
    wclaT = _pad2(params["cla_w"].T, C, Kp).astype(weight_dtype)   # (C, Kp)
    bcla = _pad2(params["cla_b"].reshape(1, K), 1, Kp)

    if block_b is None:
        block_b = _pick_block_b(B, T)
    assert B % block_b == 0, "block_b must divide the batch size"
    grid = (B // block_b,)
    if vmem_limit_bytes is None:
        vmem_limit_bytes = _vmem_limit_bytes(block_b, T, C, Kp)

    out_shape = (
        jax.ShapeDtypeStruct((B, Kp), jnp.float32),      # clipwise_output
        jax.ShapeDtypeStruct((B, Kp), jnp.float32),      # logit
        jax.ShapeDtypeStruct((B, T, Kp), act_dtype),     # segmentwise logits
    )
    # NOTE: at realistic encoder widths (C ~ 1280-2048) the constant-index
    # weight specs could be single-buffered (pipeline_mode=pl.Buffered(1)) to
    # save VMEM on v7x; left at the portable default here.
    in_specs = [
        pl.BlockSpec((block_b, T, C), lambda b: (b, 0, 0)),
        pl.BlockSpec((C, C), lambda b: (0, 0)),
        pl.BlockSpec((1, C), lambda b: (0, 0)),
        pl.BlockSpec((C, Kp), lambda b: (0, 0)),
        pl.BlockSpec((1, Kp), lambda b: (0, 0)),
        pl.BlockSpec((C, Kp), lambda b: (0, 0)),
        pl.BlockSpec((1, Kp), lambda b: (0, 0)),
    ]
    out_specs = (
        pl.BlockSpec((block_b, Kp), lambda b: (b, 0)),
        pl.BlockSpec((block_b, Kp), lambda b: (b, 0)),
        pl.BlockSpec((block_b, T, Kp), lambda b: (b, 0, 0)),
    )
    clip, logit, seg_logit = pl.pallas_call(
        sed_head_kernel,
        out_shape=out_shape,
        grid=grid,
        in_specs=in_specs,
        out_specs=out_specs,
        compiler_params=pltpu.CompilerParams(
            dimension_semantics=("parallel",),
            vmem_limit_bytes=vmem_limit_bytes),
    )(x, w1t, b1, wattT, batt, wclaT, bcla)

    # Drop the zero-padded class columns; sigmoid on the small sliced array.
    seg_logit = seg_logit[:, :, :K].astype(jnp.float32)
    seg_out = jax.nn.sigmoid(seg_logit)
    return clip[:, :K], logit[:, :K], seg_out, seg_logit


# ---------------------------------------------------------------------------
# JAX glue: interpolate + pad_framewise_output (cheap indexing, not hot path)
# ---------------------------------------------------------------------------
def interpolate_time(x, ratio):
    # (B, T, K) -> (B, T*ratio, K), repeating every time step `ratio` times.
    return jnp.repeat(x, ratio, axis=1)


def pad_framewise_output(x, frames_num):
    # Matches the spec: F.interpolate(..., mode='bilinear', align_corners=True)
    # along time (class dim keeps its size -> identity).
    B, T, K = x.shape
    if T == frames_num:
        return x
    pos = jnp.arange(frames_num, dtype=jnp.float32) * (T - 1) / (frames_num - 1)
    lo = jnp.floor(pos).astype(jnp.int32)
    hi = jnp.minimum(lo + 1, T - 1)
    w = (pos - lo.astype(jnp.float32))[None, :, None]
    return x[:, lo, :] * (1.0 - w) + x[:, hi, :] * w


def timm_sed_forward(feat, params, frames_num, block_b=None):
    clip, logit, seg_out, seg_logit = sed_head(feat, params, block_b=block_b)
    ratio = frames_num // seg_out.shape[1]
    framewise_output = pad_framewise_output(
        interpolate_time(seg_out, ratio), frames_num)
    framewise_logit = pad_framewise_output(
        interpolate_time(seg_logit, ratio), frames_num)
    return {
        "framewise_output": framewise_output,
        "segmentwise_output": seg_out,
        "logit": logit,
        "framewise_logit": framewise_logit,
        "clipwise_output": clip,
    }


# ---------------------------------------------------------------------------
# Deterministic parameter init (xavier_uniform weights, zero biases)
# ---------------------------------------------------------------------------
def xavier_uniform(key, shape):
    fan_out, fan_in = shape
    limit = jnp.sqrt(6.0 / (fan_in + fan_out))
    return jax.random.uniform(key, shape, jnp.float32, -limit, limit)


def make_params(key, in_features, num_classes):
    k1, k2, k3 = jax.random.split(key, 3)
    return {
        "fc1_w": xavier_uniform(k1, (in_features, in_features)),
        "fc1_b": jnp.zeros((1, in_features), jnp.float32),
        "att_w": xavier_uniform(k2, (num_classes, in_features)),
        "att_b": jnp.zeros((1, num_classes), jnp.float32),
        "cla_w": xavier_uniform(k3, (num_classes, in_features)),
        "cla_b": jnp.zeros((1, num_classes), jnp.float32),
    }


# ---------------------------------------------------------------------------
# Pure-JAX reference (mirrors the kernel's bf16 activation/operand
# quantization so the comparison is tight; remaining deltas: accumulation
# order, approx reciprocal in softmax, bf16 segmentwise store).
# ---------------------------------------------------------------------------
def ref_head(feat, p, weight_dtype=jnp.bfloat16):
    q = lambda a: a.astype(weight_dtype).astype(jnp.float32)
    x = q(jnp.mean(feat, axis=2))                                 # (B, C, T)
    xm = jnp.pad(x, ((0, 0), (0, 0), (1, 1)), constant_values=-jnp.inf)
    x1 = jnp.maximum(jnp.maximum(xm[..., :-2], xm[..., 1:-1]), xm[..., 2:])
    xa = jnp.pad(x, ((0, 0), (0, 0), (1, 1)))
    x2 = (xa[..., :-2] + xa[..., 1:-1] + xa[..., 2:]) * (1.0 / 3.0)
    xp = jnp.transpose(x1 + x2, (0, 2, 1))                        # (B, T, C)
    y = jax.nn.relu(jnp.einsum("btc,dc->btd", q(xp), q(p["fc1_w"])) + p["fc1_b"])
    yq = q(y)
    att = jnp.tanh(jnp.einsum("btc,kc->btk", yq, q(p["att_w"])) + p["att_b"])
    norm_att = jax.nn.softmax(att, axis=1)
    cla_logit = jnp.einsum("btc,kc->btk", yq, q(p["cla_w"])) + p["cla_b"]
    cla = jax.nn.sigmoid(cla_logit)
    clip = jnp.sum(norm_att * cla, axis=1)
    logit = jnp.sum(norm_att * cla_logit, axis=1)
    return clip, logit, cla_logit


if __name__ == "__main__":
    B, C, Fr, T = 16, 96, 4, 16       # batch, in_features, freq bins, time steps
    num_classes = 24
    frames_num = T * 4 + 5            # exercises pad_framewise_output (ratio=4)

    key = jax.random.PRNGKey(0)
    kf, kpkey = jax.random.split(key)
    feat = jax.random.normal(kf, (B, C, Fr, T), jnp.float32)
    params = make_params(kpkey, C, num_classes)

    fwd = jax.jit(functools.partial(timm_sed_forward, frames_num=frames_num))
    out = fwd(feat, params)
    jax.block_until_ready(out)

    # correctness vs pure-JAX reference
    r_clip, r_logit, r_seg_logit = ref_head(feat, params)
    r_seg_logit_q = r_seg_logit.astype(jnp.bfloat16).astype(jnp.float32)
    r_seg = jax.nn.sigmoid(r_seg_logit_q)        # mirror the bf16 seg store
    rtol, atol = 2e-2, 2e-3
    assert jnp.allclose(out["clipwise_output"], r_clip, rtol=rtol, atol=atol)
    assert jnp.allclose(out["logit"], r_logit, rtol=rtol, atol=atol)
    assert jnp.allclose(out["segmentwise_output"], r_seg, rtol=rtol, atol=atol)
    ratio = frames_num // r_seg.shape[1]
    # Slightly looser atol: framewise logits pass through the bf16 segmentwise
    # store and the bilinear mix can cancel toward zero.
    assert jnp.allclose(
        out["framewise_logit"],
        pad_framewise_output(interpolate_time(r_seg_logit_q, ratio), frames_num),
        rtol=rtol, atol=1e-2)
    assert out["framewise_output"].shape == (B, frames_num, num_classes)
    assert out["clipwise_output"].shape == (B, num_classes)
    assert out["segmentwise_output"].shape == (B, T, num_classes)

    print("KERNEL_OK")
</pallas_src>

<mosaic_0001>
module attributes {stable_mosaic.version = 11 : i64} {
  func.func @sed_head_kernel(%arg0: i32, %arg1: memref<8x16x96xbf16, #tpu.memory_space<vmem>>, %arg2: memref<96x96xbf16, #tpu.memory_space<vmem>>, %arg3: memref<1x96xf32, #tpu.memory_space<vmem>>, %arg4: memref<96x128xbf16, #tpu.memory_space<vmem>>, %arg5: memref<1x128xf32, #tpu.memory_space<vmem>>, %arg6: memref<96x128xbf16, #tpu.memory_space<vmem>>, %arg7: memref<1x128xf32, #tpu.memory_space<vmem>>, %arg8: memref<8x128xf32, #tpu.memory_space<vmem>>, %arg9: memref<8x128xf32, #tpu.memory_space<vmem>>, %arg10: memref<8x16x128xbf16, #tpu.memory_space<vmem>>) attributes {dimension_semantics = [#tpu.dimension_semantics<parallel>], iteration_bounds = array<i64: 2>, scalar_prefetch = 0 : i64, scratch_operands = 0 : i64, tpu.core_type = #tpu.core_type<tc>, window_params = [{transform_indices = @transform_0, window_bounds = array<i64: 8, 16, 96>}, {pipeline_mode = #tpu.pipeline_mode<synchronous>, transform_indices = @transform_1, window_bounds = array<i64: 96, 96>}, {pipeline_mode = #tpu.pipeline_mode<synchronous>, transform_indices = @transform_2, window_bounds = array<i64: 1, 96>}, {pipeline_mode = #tpu.pipeline_mode<synchronous>, transform_indices = @transform_3, window_bounds = array<i64: 96, 128>}, {pipeline_mode = #tpu.pipeline_mode<synchronous>, transform_indices = @transform_4, window_bounds = array<i64: 1, 128>}, {pipeline_mode = #tpu.pipeline_mode<synchronous>, transform_indices = @transform_5, window_bounds = array<i64: 96, 128>}, {pipeline_mode = #tpu.pipeline_mode<synchronous>, transform_indices = @transform_6, window_bounds = array<i64: 1, 128>}, {transform_indices = @transform_7, window_bounds = array<i64: 8, 128>}, {transform_indices = @transform_8, window_bounds = array<i64: 8, 128>}, {transform_indices = @transform_9, window_bounds = array<i64: 8, 16, 128>}]} {
    %c0 = arith.constant 0 : index
    %c0_0 = arith.constant 0 : index
    %c0_1 = arith.constant 0 : index
    %0 = vector.load %arg1[%c0, %c0_0, %c0_1] : memref<8x16x96xbf16, #tpu.memory_space<vmem>>, vector<8x16x96xbf16>
    %1 = arith.extf %0 : vector<8x16x96xbf16> to vector<8x16x96xf32>
    %2 = vector.shape_cast %1 : vector<8x16x96xf32> to vector<128x96xf32>
    %3 = tpu.iota {dimensions = array<i32: 0>} : vector<128x1xi32>
    %c16_i32 = arith.constant 16 : i32
    %c0_i32 = arith.constant 0 : i32
    %4 = arith.cmpi eq, %c16_i32, %c0_i32 : i32
    %c1_i32 = arith.constant 1 : i32
    %5 = arith.select %4, %c1_i32, %c16_i32 : i32
    %6 = vector.broadcast %5 : i32 to vector<128x1xi32>
    %7 = arith.remsi %3, %6 : vector<128x1xi32>
    %c0_i32_2 = arith.constant 0 : i32
    %8 = vector.broadcast %c0_i32_2 : i32 to vector<128x1xi32>
    %9 = arith.cmpi ne, %7, %8 : vector<128x1xi32>
    %c0_i32_3 = arith.constant 0 : i32
    %10 = vector.broadcast %c0_i32_3 : i32 to vector<128x1xi32>
    %11 = arith.cmpi slt, %7, %10 : vector<128x1xi32>
    %c0_i32_4 = arith.constant 0 : i32
    %12 = arith.cmpi slt, %5, %c0_i32_4 : i32
    %13 = vector.broadcast %12 : i1 to vector<128x1xi1>
    %14 = vector.broadcast %13 : vector<128x1xi1> to vector<128x1xi1>
    %15 = arith.xori %11, %14 : vector<128x1xi1>
    %16 = arith.andi %15, %9 : vector<128x1xi1>
    %17 = vector.broadcast %5 : i32 to vector<128x1xi32>
    %18 = arith.addi %7, %17 : vector<128x1xi32>
    %19 = arith.select %16, %18, %7 : vector<128x1xi1>, vector<128x1xi32>
    %c0_i32_5 = arith.constant 0 : i32
    %20 = vector.broadcast %c0_i32_5 : i32 to vector<128x1xi32>
    %21 = arith.cmpi eq, %19, %20 : vector<128x1xi32>
    %22 = arith.extui %21 : vector<128x1xi1> to vector<128x1xi32>
    %23 = arith.sitofp %22 : vector<128x1xi32> to vector<128x1xf32>
    %c15_i32 = arith.constant 15 : i32
    %24 = vector.broadcast %c15_i32 : i32 to vector<128x1xi32>
    %25 = arith.cmpi eq, %19, %24 : vector<128x1xi32>
    %26 = arith.extui %25 : vector<128x1xi1> to vector<128x1xi32>
    %27 = arith.sitofp %26 : vector<128x1xi32> to vector<128x1xf32>
    %c1_i32_6 = arith.constant 1 : i32
    %28 = tpu.dynamic_rotate %2 by %c1_i32_6 dim 0 : vector<128x96xf32>, i32 -> vector<128x96xf32>
    %c127_i32 = arith.constant 127 : i32
    %29 = tpu.dynamic_rotate %2 by %c127_i32 dim 0 : vector<128x96xf32>, i32 -> vector<128x96xf32>
    %cst = arith.constant 1.000000e+30 : f32
    %30 = vector.broadcast %cst : f32 to vector<128x1xf32>
    %31 = arith.mulf %23, %30 : vector<128x1xf32>
    %32 = vector.broadcast %31 : vector<128x1xf32> to vector<128x96xf32>
    %33 = arith.subf %28, %32 : vector<128x96xf32>
    %34 = arith.maximumf %33, %2 : vector<128x96xf32>
    %cst_7 = arith.constant 1.000000e+30 : f32
    %35 = vector.broadcast %cst_7 : f32 to vector<128x1xf32>
    %36 = arith.mulf %27, %35 : vector<128x1xf32>
    %37 = vector.broadcast %36 : vector<128x1xf32> to vector<128x96xf32>
    %38 = arith.subf %29, %37 : vector<128x96xf32>
    %39 = arith.maximumf %34, %38 : vector<128x96xf32>
    %cst_8 = arith.constant 1.000000e+00 : f32
    %40 = vector.broadcast %cst_8 : f32 to vector<128x1xf32>
    %41 = arith.subf %40, %23 : vector<128x1xf32>
    %42 = vector.broadcast %41 : vector<128x1xf32> to vector<128x96xf32>
    %43 = arith.mulf %28, %42 : vector<128x96xf32>
    %44 = arith.addf %43, %2 : vector<128x96xf32>
    %cst_9 = arith.constant 1.000000e+00 : f32
    %45 = vector.broadcast %cst_9 : f32 to vector<128x1xf32>
    %46 = arith.subf %45, %27 : vector<128x1xf32>
    %47 = vector.broadcast %46 : vector<128x1xf32> to vector<128x96xf32>
    %48 = arith.mulf %29, %47 : vector<128x96xf32>
    %49 = arith.addf %44, %48 : vector<128x96xf32>
    %cst_10 = arith.constant 0.333333343 : f32
    %50 = vector.broadcast %cst_10 : f32 to vector<128x96xf32>
    %51 = arith.mulf %49, %50 : vector<128x96xf32>
    %52 = arith.addf %39, %51 : vector<128x96xf32>
    %53 = arith.truncf %52 : vector<128x96xf32> to vector<128x96xbf16>
    %c0_11 = arith.constant 0 : index
    %c0_12 = arith.constant 0 : index
    %54 = vector.load %arg2[%c0_11, %c0_12] : memref<96x96xbf16, #tpu.memory_space<vmem>>, vector<96x96xbf16>
    %cst_13 = arith.constant dense<0.000000e+00> : vector<128x96xf32>
    %55 = tpu.matmul %53, %54, %cst_13 {dimension_numbers = #tpu.dot_dimension_numbers<[1], [0], [0], [1], [0, 0, 1, 1], [], []>} : vector<128x96xbf16>, vector<96x96xbf16>, vector<128x96xf32> -> vector<128x96xf32>
    %c0_14 = arith.constant 0 : index
    %c0_15 = arith.constant 0 : index
    %56 = vector.load %arg3[%c0_14, %c0_15] : memref<1x96xf32, #tpu.memory_space<vmem>>, vector<1x96xf32>
    %57 = vector.broadcast %56 : vector<1x96xf32> to vector<128x96xf32>
    %58 = arith.addf %55, %57 : vector<128x96xf32>
    %cst_16 = arith.constant 0.000000e+00 : f32
    %59 = vector.broadcast %cst_16 : f32 to vector<128x96xf32>
    %60 = arith.maximumf %58, %59 : vector<128x96xf32>
    %61 = arith.truncf %60 : vector<128x96xf32> to vector<128x96xbf16>
    %c0_17 = arith.constant 0 : index
    %c0_18 = arith.constant 0 : index
    %62 = vector.load %arg4[%c0_17, %c0_18] : memref<96x128xbf16, #tpu.memory_space<vmem>>, vector<96x128xbf16>
    %cst_19 = arith.constant dense<0.000000e+00> : vector<128x128xf32>
    %63 = tpu.matmul %61, %62, %cst_19 {dimension_numbers = #tpu.dot_dimension_numbers<[1], [0], [0], [1], [0, 0, 1, 1], [], []>} : vector<128x96xbf16>, vector<96x128xbf16>, vector<128x128xf32> -> vector<128x128xf32>
    %c0_20 = arith.constant 0 : index
    %c0_21 = arith.constant 0 : index
    %64 = vector.load %arg5[%c0_20, %c0_21] : memref<1x128xf32, #tpu.memory_space<vmem>>, vector<1x128xf32>
    %65 = vector.broadcast %64 : vector<1x128xf32> to vector<128x128xf32>
    %66 = arith.addf %63, %65 : vector<128x128xf32>
    %67 = math.tanh %66 : vector<128x128xf32>
    %68 = vector.shape_cast %67 : vector<128x128xf32> to vector<8x16x128xf32>
    %c0_22 = arith.constant 0 : index
    %c0_23 = arith.constant 0 : index
    %69 = vector.load %arg6[%c0_22, %c0_23] : memref<96x128xbf16, #tpu.memory_space<vmem>>, vector<96x128xbf16>
    %cst_24 = arith.constant dense<0.000000e+00> : vector<128x128xf32>
    %70 = tpu.matmul %61, %69, %cst_24 {dimension_numbers = #tpu.dot_dimension_numbers<[1], [0], [0], [1], [0, 0, 1, 1], [], []>} : vector<128x96xbf16>, vector<96x128xbf16>, vector<128x128xf32> -> vector<128x128xf32>
    %c0_25 = arith.constant 0 : index
    %c0_26 = arith.constant 0 : index
    %71 = vector.load %arg7[%c0_25, %c0_26] : memref<1x128xf32, #tpu.memory_space<vmem>>, vector<1x128xf32>
    %72 = vector.broadcast %71 : vector<1x128xf32> to vector<128x128xf32>
    %73 = arith.addf %70, %72 : vector<128x128xf32>
    %74 = vector.shape_cast %73 : vector<128x128xf32> to vector<8x16x128xf32>
    %75 = arith.negf %74 : vector<8x16x128xf32>
    %76 = math.exp %75 : vector<8x16x128xf32>
    %cst_27 = arith.constant 1.000000e+00 : f32
    %77 = vector.broadcast %cst_27 : f32 to vector<8x16x128xf32>
    %78 = arith.addf %77, %76 : vector<8x16x128xf32>
    %79 = arith.divf %77, %78 : vector<8x16x128xf32>
    %cst_28 = arith.constant dense<0xFF800000> : vector<8x128xf32>
    %80 = vector.multi_reduction <maximumf>, %68, %cst_28 [1] : vector<8x16x128xf32> to vector<8x128xf32>
    %81 = vector.shape_cast %80 : vector<8x128xf32> to vector<8x1x128xf32>
    %82 = vector.broadcast %81 : vector<8x1x128xf32> to vector<8x16x128xf32>
    %83 = arith.subf %68, %82 : vector<8x16x128xf32>
    %84 = math.exp %83 : vector<8x16x128xf32>
    %cst_29 = arith.constant dense<0.000000e+00> : vector<8x128xf32>
    %85 = vector.multi_reduction <add>, %84, %cst_29 [1] : vector<8x16x128xf32> to vector<8x128xf32>
    %86 = vector.shape_cast %85 : vector<8x128xf32> to vector<8x1x128xf32>
    %87 = tpu.reciprocal %86 {approx = true} : vector<8x1x128xf32> -> vector<8x1x128xf32>
    %88 = vector.broadcast %87 : vector<8x1x128xf32> to vector<8x16x128xf32>
    %89 = arith.mulf %84, %88 : vector<8x16x128xf32>
    %90 = arith.mulf %89, %79 : vector<8x16x128xf32>
    %cst_30 = arith.constant dense<0.000000e+00> : vector<8x128xf32>
    %91 = vector.multi_reduction <add>, %90, %cst_30 [1] : vector<8x16x128xf32> to vector<8x128xf32>
    %c0_31 = arith.constant 0 : index
    %c0_32 = arith.constant 0 : index
    %92 = vector.load %arg8[%c0_31, %c0_32] : memref<8x128xf32, #tpu.memory_space<vmem>>, vector<8x128xf32>
    tpu.vector_store %arg8[%c0_31, %c0_32], %91 {strides = array<i32>} : memref<8x128xf32, #tpu.memory_space<vmem>>, vector<8x128xf32>,
    %93 = arith.mulf %89, %74 : vector<8x16x128xf32>
    %cst_33 = arith.constant dense<0.000000e+00> : vector<8x128xf32>
    %94 = vector.multi_reduction <add>, %93, %cst_33 [1] : vector<8x16x128xf32> to vector<8x128xf32>
    %c0_34 = arith.constant 0 : index
    %c0_35 = arith.constant 0 : index
    %95 = vector.load %arg9[%c0_34, %c0_35] : memref<8x128xf32, #tpu.memory_space<vmem>>, vector<8x128xf32>
    tpu.vector_store %arg9[%c0_34, %c0_35], %94 {strides = array<i32>} : memref<8x128xf32, #tpu.memory_space<vmem>>, vector<8x128xf32>,
    %96 = arith.truncf %74 : vector<8x16x128xf32> to vector<8x16x128xbf16>
    %c0_36 = arith.constant 0 : index
    %c0_37 = arith.constant 0 : index
    %c0_38 = arith.constant 0 : index
    %97 = vector.load %arg10[%c0_36, %c0_37, %c0_38] : memref<8x16x128xbf16, #tpu.memory_space<vmem>>, vector<8x16x128xbf16>
    tpu.vector_store %arg10[%c0_36, %c0_37, %c0_38], %96 {strides = array<i32>} : memref<8x16x128xbf16, #tpu.memory_space<vmem>>, vector<8x16x128xbf16>,
    return
  }
  func.func @transform_0(%arg0: i32) -> (i32, i32, i32) {
    %c0_i32 = arith.constant 0 : i32
    %c0_i32_0 = arith.constant 0 : i32
    %c0_i32_1 = arith.constant 0 : i32
    return %arg0, %c0_i32, %c0_i32_0 : i32, i32, i32
  }
  func.func @transform_1(%arg0: i32) -> (i32, i32) {
    %c0_i32 = arith.constant 0 : i32
    %c0_i32_0 = arith.constant 0 : i32
    %c0_i32_1 = arith.constant 0 : i32
    return %c0_i32, %c0_i32_0 : i32, i32
  }
  func.func @transform_2(%arg0: i32) -> (i32, i32) {
    %c0_i32 = arith.constant 0 : i32
    %c0_i32_0 = arith.constant 0 : i32
    %c0_i32_1 = arith.constant 0 : i32
    return %c0_i32, %c0_i32_0 : i32, i32
  }
  func.func @transform_3(%arg0: i32) -> (i32, i32) {
    %c0_i32 = arith.constant 0 : i32
    %c0_i32_0 = arith.constant 0 : i32
    %c0_i32_1 = arith.constant 0 : i32
    return %c0_i32, %c0_i32_0 : i32, i32
  }
  func.func @transform_4(%arg0: i32) -> (i32, i32) {
    %c0_i32 = arith.constant 0 : i32
    %c0_i32_0 = arith.constant 0 : i32
    %c0_i32_1 = arith.constant 0 : i32
    return %c0_i32, %c0_i32_0 : i32, i32
  }
  func.func @transform_5(%arg0: i32) -> (i32, i32) {
    %c0_i32 = arith.constant 0 : i32
    %c0_i32_0 = arith.constant 0 : i32
    %c0_i32_1 = arith.constant 0 : i32
    return %c0_i32, %c0_i32_0 : i32, i32
  }
  func.func @transform_6(%arg0: i32) -> (i32, i32) {
    %c0_i32 = arith.constant 0 : i32
    %c0_i32_0 = arith.constant 0 : i32
    %c0_i32_1 = arith.constant 0 : i32
    return %c0_i32, %c0_i32_0 : i32, i32
  }
  func.func @transform_7(%arg0: i32) -> (i32, i32) {
    %c0_i32 = arith.constant 0 : i32
    %c0_i32_0 = arith.constant 0 : i32
    return %arg0, %c0_i32 : i32, i32
  }
  func.func @transform_8(%arg0: i32) -> (i32, i32) {
    %c0_i32 = arith.constant 0 : i32
    %c0_i32_0 = arith.constant 0 : i32
    return %arg0, %c0_i32 : i32, i32
  }
  func.func @transform_9(%arg0: i32) -> (i32, i32, i32) {
    %c0_i32 = arith.constant 0 : i32
    %c0_i32_0 = arith.constant 0 : i32
    %c0_i32_1 = arith.constant 0 : i32
    return %arg0, %c0_i32, %c0_i32_0 : i32, i32, i32
  }
}

</mosaic_0001>

<bundles_post_ra>
// kernel: timm_sed_forward.1
= control target key start
LH: loop header
LB: loop body
LE: loop exit
PB: predicated region body
PF: predicated region fallthrough
CT: control target
= control target key end

     0   :  { %s3761_s0 = inlined_call_operand.vmem [shape: bf16[16,16,96], index: 0, kind: input, shape index: {}]   ;;  %s3762_s1 = inlined_call_operand.vmem [shape: bf16[96,96], index: 1, kind: input, shape index: {}]   ;;  %s3763_s2 = inlined_call_operand.vmem [shape: f32[1,96], index: 2, kind: input, shape index: {}]   ;;  %s3764_s3 = inlined_call_operand.vmem [shape: bf16[96,128], index: 3, kind: input, shape index: {}]   ;;  %s3765_s4 = inlined_call_operand.vmem [shape: f32[1,128], index: 4, kind: input, shape index: {}]   ;;  %s3766_s5 = inlined_call_operand.vmem [shape: bf16[96,128], index: 5, kind: input, shape index: {}]   ;;  %s3767_s6 = inlined_call_operand.vmem [shape: f32[1,128], index: 6, kind: input, shape index: {}]   ;;  %s3768_s7 = inlined_call_operand.hbm [shape: f32[16,128], index: 7, kind: output, shape index: {0}]   ;;  %s3769_s8 = inlined_call_operand.hbm [shape: f32[16,128], index: 8, kind: output, shape index: {1}]   ;;  %s3770_s9 = inlined_call_operand.vmem [shape: bf16[16,16,128], index: 9, kind: output, shape index: {2}]  }
   0x1   :  { %3771 = sst [smem:[#allocation8_spill]] %s3761_s0 }
   0x2   :  { %3772 = sst [smem:[#allocation9_spill]] %s3762_s1 }
   0x3   :  { %15 = vsyncpa [#allocation3], 0 }
   0x4   :  { %17 = vsyncpa [#allocation3 + $0x1], 0 }
   0x5   :  { %18 = vsyncpa [#allocation5], 0 }
   0x6   :  { %20 = vsyncpa [#allocation5 + $0x1], 0  ;;  %s2956_s30 = smov 0   ;;  %s2958_s10 = smov 0  }
   0x7   :  { %s2960_s11 = smov 0   ;;  %s2962_s12 = smov 0  }
   0x8 LB: > { %s2977_s13 = sadd.s32 4294967295, %s2901_s12   ;;  %s2247_s14 = sadd.s32 4294967294, %s2901_s12   ;;  %s2901_s12 = sphi %s2962_s12, %s3780_s12   ;;  %s2897_s11 = sphi %s2960_s11, %s3779_s11   ;;  %s2893_s10 = sphi %s2958_s10, %s3778_s10   ;;  %s2889_s30 = sphi %s2956_s30, %s3777_s30  }
   0x9   : > { %s2981_s15 = sadd.s32 1, %s2901_s12   ;;  %s185_s16 = sadd.s32 1, %s2897_s11 }
   0xa   : > { %s182_s17 = ssub.s32 %s2901_s12, %s2981_s15  ;;  %p195_p0 = scmp.ne.s32.totalorder %s2897_s11, %s2893_s10 }
   0xb   : > { %p183_p1 = scmp.eq.s32.totalorder %s182_s17, 0  ;;  %p196_p2 = scmp.eq.s32.totalorder %s2977_s13, 1 }
   0xc   : > { %p201_p3 = scmp.ne.s32.totalorder %s2893_s10, %s2889_s30  ;;  %p202_p4 = scmp.eq.s32.totalorder %s2247_s14, 1 }
   0xd   : > { %s2992_s18 = scalar_select %p183_p1, %s2897_s11, %s185_s16  }
   0xe   : > { %p2994_p5 = por %p196_p2, %p195_p0  ;;  %p2998_p6 = por %p202_p4, %p201_p3 }
   0xf   : > { %p2250_p7 = scmp.ge.s32.totalorder %s2901_s12, 1  ;;  %p300_p8 = scmp.lt.s32.totalorder %s2901_s12, 3 }
  0x11   : > { %p301_p9 = pnand %p2250_p7, %p300_p8 }
  0x12   : > { %s3775_s1 = sld [smem:[#allocation9_spill]] (!%p301_p9)  ;;  %s2253_s23 = sshll.u32 (!%p301_p9), %s2977_s13, 3  ;;  %v395_v1 = vlaneseq (!%p301_p9)  ;;  %v2903_v19 = vmov (!%p301_p9), 0.0   ;;  %v2651_v25 = vld [vmem:[%s3764_s3] sm:$0xff] (!%p301_p9)   ;;  %v2653_v34 = vld [vmem:[%s3764_s3 + $0x8] sm:$0xff] (!%p301_p9)   ;;  %v2655_v47 = vld [vmem:[%s3764_s3 + $0x10] sm:$0xff] (!%p301_p9)  }
  0x13   : > { %304 = sbr.rel (%p301_p9) target bundleno = 686 (0x2ae), region = 48  ;;  %p349_p10 = scmp.lt.s32.totalorder (!%p301_p9), %s2253_s23, 15  ;;  %2532 = vmatprep.subr.bf16.mxu1 (!%p301_p9), %v2651_v25  ;;  %vm1053_vm4 = vcmask (!%p301_p9), 785408   ;;  %v3098_v60 = vld [vmem:[%s3766_s5] sm:$0xff] (!%p301_p9)   ;;  %v2657_v61 = vld [vmem:[%s3764_s3 + $0x18] sm:$0xff] (!%p301_p9)  }
  0x14   : > { %v3011_v3 = vshrl.u32 (!%p301_p9), %v395_v1, 7  ;;  %s3776_s0 = sld [smem:[#allocation8_spill]] (!%p301_p9)  ;;  %2533 = vmatpush3.bf16.msra.mxu1 (!%p301_p9), %v2651_v25  ;;  %s2354_s21 = sshll.u32 (!%p301_p9), %s2977_s13, 7 }
  0x15   : > { %2534 = vmatprep.subr.bf16.mxu1 (!%p301_p9), %v2653_v34  ;;  %s3688_s29 = scalar_lea.hbm (!%p301_p9), %s3768_s7, %s2354_s21  ;;  %s2904_s27 = smov (!%p301_p9), [#allocation2]  }
  0x16   : > { %v397_v5 = vadd.s32 (!%p301_p9), 8, %v3011_v3  ;;  %v416_v6 = vand.u32 (!%p301_p9), 15, %v3011_v3  ;;  %vm716_vm0 = vcmp.lt.s32.totalorder (!%p301_p9), %v3011_v3, 1  ;;  %vm749_vm1 = vcmp.lt.s32.totalorder (!%p301_p9), %v3011_v3, 7 }
  0x17   : > { %v398_v15 = vadd.s32 (!%p301_p9), 16, %v3011_v3  ;;  %v399_v45 = vadd.s32 (!%p301_p9), 24, %v3011_v3 }
  0x18   : > { %v2645_v0 = vld [vmem:[%s3775_s1] sm:$0xff] (!%p301_p9)   ;;  %v2646_v2 = vld [vmem:[%s3775_s1 + $0x8] sm:$0xff] (!%p301_p9)   ;;  %v2647_v4 = vld [vmem:[%s3775_s1 + $0x10] sm:$0xff] (!%p301_p9)   ;;  %v423_v7 = vand.u32 (!%p301_p9), 15, %v397_v5  ;;  %vm604_vm2 = vcmp.eq.s32.totalorder (!%p301_p9), %v416_v6, 0  ;;  %2535 = vmatpush3.bf16.msra.mxu1 (!%p301_p9), %v2653_v34 }
  0x19   : > { %2504 = vmatprep.subr.bf16.mxu0 (!%p301_p9), %v2645_v0  ;;  %v2648_v11 = vld [vmem:[%s3775_s1 + $0x18] sm:$0xff] (!%p301_p9)   ;;  %v2649_v18 = vld [vmem:[%s3775_s1 + $0x20] sm:$0xff] (!%p301_p9)   ;;  %v2259_v20 = vsel (!%p301_p9), %vm604_vm2, 1.0, %v2903_v19  ;;  %v430_v46 = vand.u32 (!%p301_p9), 15, %v398_v15  ;;  %v2650_v48 = vld [vmem:[%s3775_s1 + $0x28] sm:$0xff] (!%p301_p9)   ;;  %v437_v54 = vand.u32 (!%p301_p9), 15, %v399_v45  ;;  %2536 = vmatprep.subr.bf16.mxu1 (!%p301_p9), %v2655_v47 }
  0x1a   : > { %2505 = vmatpush3.bf16.msra.mxu0 %v2645_v0  ;;  %s3782_s23 = smov (!%p349_p10, %s2253_s23), 15  ;;  %vm653_vm3 = vcmp.eq.s32.totalorder %v423_v7, 15  ;;  %v766_v31 = vmul.f32 1e+30, %v2259_v20  ;;  %v862_v33 = vsub.f32 1.0, %v2259_v20 }
  0x1b   : > { %2506 = vmatprep.subr.bf16.mxu0 %v2646_v2  ;;  %s2358_s28 = sshll.u32 %s3782_s23, 3  ;;  %v2267_v21 = vsel %vm653_vm3, 1.0, %v2903_v19  ;;  %vm606_vm5 = vcmp.eq.s32.totalorder %v430_v46, 0  ;;  %vm655_vm6 = vcmp.eq.s32.totalorder %v437_v54, 15  ;;  %s3678_s23 = sand.u32 1, %s2893_s10  }
  0x1c   : > { %s3025_s16 = scalar_lea.vmem %s3776_s0, %s2358_s28  ;;  %v815_v32 = vmul.f32 1e+30, %v2267_v21  ;;  %v911_v43 = vsub.f32 1.0, %v2267_v21  ;;  %v2260_v58 = vsel %vm606_vm5, 1.0, %v2903_v19  ;;  %2537 = vmatpush3.bf16.msra.mxu1 %v2655_v47  ;;  %s3381_s17 = scalar_lea.vmem %s3770_s9, %s2358_s28 }
  0x1d   : > { %v2377_v8 = vld [vmem:[%s3025_s16] sm:$0xff]   ;;  %v2448_v9 = vld [vmem:[%s3025_s16 + $0x8] sm:$0xff]   ;;  %v3031_v10 = vld [vmem:[%s3025_s16 + $0x38] sm:$0xff]   ;;  %v768_v6 = vmul.f32 1e+30, %v2260_v58  ;;  %v864_v20 = vsub.f32 1.0, %v2260_v58  ;;  %2538 = vmatprep.subr.bf16.mxu1 %v2657_v61 }
  0x1e   : > { %2507 = vmatpush3.bf16.msra.mxu0 %v2646_v2  ;;  %v3038_v12 = vunpack.c.l.bf16 %v2377_v8  ;;  %v2379_v13 = vunpack.c.h.bf16 %v2377_v8  ;;  %v3040_v14 = vunpack.c.l.bf16 %v2448_v9  ;;  %v3044_v16 = vunpack.c.h.bf16 %v3031_v10  ;;  %v3055_v24 = vld [vmem:[%s3025_s16 + $0x10] sm:$0xff]   ;;  %v2450_v1 = vld [vmem:[%s3025_s16 + $0x18] sm:$0xff]   ;;  %s2251_s28 = sshll.u32 %s3678_s23, 3  ;;  %s2811_s0 = sshll.u32 %s2904_s27, 4  ;;  %s2812_s0 = int_to_ptr.vmem [resolvable:$false] %s2811_s0 }
  0x1f   : > { %2508 = vmatprep.subr.bf16.mxu0 %v2647_v4  ;;  %v3046_v17 = vunpack.c.h.bf16 %v2448_v9  ;;  %v3079_v44 = vunpack.c.l.bf16 %v3055_v24  ;;  %s332_s22 = scalar_lea.vmem [#allocation2], %s2251_s28  ;;  %s2813_s1 = scalar_lea.vmem %s2812_s0, 256 }
  0x20   : > { %v700_v22 = vrot.slane %v3038_v12, 7  ;;  %v701_v23 = vrot.slane %v2379_v13, 7  ;;  %v715_v26 = vrot.slane %v3044_v16, 7  ;;  %v733_v27 = vrot.slane %v3038_v12, 1  ;;  %2539 = vmatpush3.bf16.msra.mxu1 %v2657_v61  ;;  %s2113_s24 = sshll.u32 %s332_s22, 4  ;;  %s3690_s24 = int_to_ptr.vmem [resolvable:$true] %s2113_s24 }
  0x21   : > { %v734_v28 = vrot.slane %v2379_v13, 1  ;;  %v735_v29 = vrot.slane %v3040_v14, 1  ;;  %v702_v52 = vrot.slane %v3040_v14, 7  ;;  %v703_v55 = vrot.slane %v3046_v17, 7  ;;  %s2807_s26 = scalar_lea.vmem %s3690_s24, 128  ;;  %p2814_p0 = scmp.lt.s32.totalorder %s3690_s24, %s2812_s0 }
  0x22   : > { %2509 = vmatpush3.bf16.msra.mxu0 %v2647_v4  ;;  %v731_v30 = vsel %vm716_vm0, %v700_v22, %v701_v23  ;;  %v732_v35 = vsel %vm716_vm0, %v715_v26, %v700_v22  ;;  %v736_v0 = vrot.slane %v3046_v17, 1  ;;  %v2268_v4 = vsel %vm655_vm6, 1.0, %v2903_v19  ;;  %p2808_p11 = scmp.ne.s32.totalorder %s3690_s24, %s2807_s26  ;;  %p2815_p1 = scmp.lt.s32.totalorder %s2813_s1, %s2807_s26 }
  0x23   : > { %2510 = vmatprep.subr.bf16.mxu0 %v2648_v11  ;;  %v763_v36 = vsel %vm749_vm1, %v734_v28, %v735_v29  ;;  %v764_v37 = vsel %vm749_vm1, %v733_v27, %v734_v28  ;;  %v799_v38 = vmax.f32 %v731_v30, %v2379_v13  ;;  %v782_v39 = vsub.f32 %v732_v35, %v766_v31 }
  0x24   : > { %v831_v40 = vsub.f32 %v763_v36, %v815_v32  ;;  %v878_v41 = vmul.f32 %v862_v33, %v732_v35  ;;  %v895_v42 = vadd.f32 %v2379_v13, %v731_v30  ;;  %v927_v53 = vmul.f32 %v911_v43, %v763_v36  ;;  %p2809_p12 = pnand %p2808_p11, %p2994_p5  ;;  %p2816_p2 = por %p2815_p1, %p2814_p0 }
  0x25   : > { %v798_v49 = vmax.f32 %v782_v39, %v3038_v12  ;;  %v730_v59 = vsel %vm716_vm0, %v701_v23, %v702_v52  ;;  %v729_v63 = vsel %vm716_vm0, %v702_v52, %v703_v55  ;;  %v737_v5 = vrot.slane %v3079_v44, 1  ;;  %v2451_v52 = vld [vmem:[%s3025_s16 + $0x20] sm:$0xff]  }
  0x26   : > { %2511 = vmatpush3.bf16.msra.mxu0 %v2648_v11  ;;  %v847_v50 = vmax.f32 %v799_v38, %v831_v40  ;;  %v894_v51 = vadd.f32 %v3038_v12, %v878_v41  ;;  %v943_v62 = vadd.f32 %v927_v53, %v895_v42  ;;  %v762_v8 = vsel %vm749_vm1, %v735_v29, %v736_v0  ;;  %p2810_p13 = pneg %p2809_p12 }
  0x27   : > { %2512 = vmatprep.subr.bf16.mxu0 %v2649_v18  ;;  %v846_v56 = vmax.f32 %v798_v49, %v764_v37  ;;  %v801_v9 = vmax.f32 %v729_v63, %v3046_v17  ;;  %v817_v11 = vmul.f32 1e+30, %v2268_v4  ;;  %v761_v15 = vsel %vm749_vm1, %v736_v0, %v737_v5 }
  0x28   : > { %v942_v57 = vadd.f32 %v894_v51, %v764_v37  ;;  %v959_v7 = vmul.f32 0.33333334, %v943_v62  ;;  %v897_v23 = vadd.f32 %v3046_v17, %v729_v63  ;;  %v913_v25 = vsub.f32 1.0, %v2268_v4  ;;  %p2817_p3 = pnand %p2816_p2, %p2810_p13 }
  0x29   : > { %v833_v22 = vsub.f32 %v761_v15, %v817_v11  ;;  %v880_v29 = vmul.f32 %v864_v20, %v730_v59  ;;  %v2387_v30 = vunpack.c.h.bf16 %v3055_v24  ;;  %v3117_v31 = vunpack.c.l.bf16 %v2450_v1 }
  0x2a   : > { %2513 = vmatpush3.bf16.msra.mxu0 %v2649_v18  ;;  %v958_v2 = vmul.f32 0.33333334, %v942_v57  ;;  %v784_v18 = vsub.f32 %v730_v59, %v768_v6  ;;  %v975_v21 = vadd.f32 %v959_v7, %v847_v50  ;;  %v929_v34 = vmul.f32 %v913_v25, %v761_v15 }
  0x2b   : > { %2514 = vmatprep.subr.bf16.mxu0 %v2650_v48  ;;  %v849_v33 = vmax.f32 %v801_v9, %v833_v22  ;;  %v400_v35 = vadd.s32 32, %v3011_v3  ;;  %v896_v37 = vadd.f32 %v3040_v14, %v880_v29  ;;  %v401_v17 = vadd.s32 40, %v3011_v3 }
  0x2c   : > { %v974_v13 = vadd.f32 %v958_v2, %v846_v56  ;;  %v800_v28 = vmax.f32 %v784_v18, %v3040_v14  ;;  %v704_v38 = vrot.slane %v3079_v44, 7  ;;  %v945_v24 = vadd.f32 %v929_v34, %v897_v23 }
  0x2d   : > { %v444_v39 = vand.u32 15, %v400_v35  ;;  %v705_v40 = vrot.slane %v2387_v30, 7  ;;  %v738_v41 = vrot.slane %v2387_v30, 1  ;;  %v944_v42 = vadd.f32 %v896_v37, %v762_v8 }
  0x2e   : > { %2515 = vmatpush3.bf16.msra.mxu0 %v2650_v48  ;;  %v990_v32 = vpack.c.bf16 %v975_v21, %v974_v13  ;;  %v848_v36 = vmax.f32 %v800_v28, %v762_v8  ;;  %v451_v43 = vand.u32 15, %v401_v17  ;;  %v728_v45 = vsel %vm716_vm0, %v703_v55, %v704_v38  ;;  %v3145_v8 = vld [vmem:[%s3766_s5 + $0x8] sm:$0xff]  }
  0x2f   : > { %2560 = vmatprep.subr.bf16.mxu0 %v3098_v60  ;;  %v739_v46 = vrot.slane %v3117_v31, 1  ;;  %v961_v47 = vmul.f32 0.33333334, %v945_v24  ;;  %vm608_vm7 = vcmp.eq.s32.totalorder %v444_v39, 0  ;;  %v727_v14 = vsel %vm716_vm0, %v704_v38, %v705_v40  ;;  %v2452_v24 = vld [vmem:[%s3025_s16 + $0x28] sm:$0xff]  }
  0x30   : > { %2516 = vmatprep.mubr.msk.bf16.mxu0 %vm1053_vm4, %v990_v32  ;;  %v760_v48 = vsel %vm749_vm1, %v737_v5, %v738_v41  ;;  %v960_v49 = vmul.f32 0.33333334, %v944_v42  ;;  %v2261_v50 = vsel %vm608_vm7, 1.0, %v2903_v19  ;;  %vm657_vm8 = vcmp.eq.s32.totalorder %v451_v43, 15 }
  0x31   : > { %v759_v51 = vsel %vm749_vm1, %v738_v41, %v739_v46  ;;  %v977_v53 = vadd.f32 %v961_v47, %v849_v33  ;;  %v2269_v54 = vsel %vm657_vm8, 1.0, %v2903_v19  ;;  %v770_v55 = vmul.f32 1e+30, %v2261_v50 }
  0x32   : > { %v803_v56 = vmax.f32 %v727_v14, %v2387_v30  ;;  %v976_v57 = vadd.f32 %v960_v49, %v848_v36  ;;  %v819_v58 = vmul.f32 1e+30, %v2269_v54  ;;  %v866_v59 = vsub.f32 1.0, %v2261_v50 }
  0x33   : > { %v899_v61 = vadd.f32 %v2387_v30, %v727_v14  ;;  %v786_v62 = vsub.f32 %v728_v45, %v770_v55  ;;  %v915_v63 = vsub.f32 1.0, %v2269_v54  ;;  %v3137_v0 = vunpack.c.h.bf16 %v2450_v1 }
  0x34   : > { %v3139_v2 = vunpack.c.l.bf16 %v2451_v52  ;;  %v991_v4 = vpack.c.bf16 %v977_v53, %v976_v57  ;;  %v835_v5 = vsub.f32 %v759_v51, %v819_v58  ;;  %v882_v6 = vmul.f32 %v866_v59, %v728_v45 }
  0x35   : > { %v402_v7 = vadd.s32 48, %v3011_v3  ;;  %v802_v9 = vmax.f32 %v786_v62, %v3079_v44  ;;  %v931_v11 = vmul.f32 %v915_v63, %v759_v51  ;;  %v403_v13 = vadd.s32 56, %v3011_v3 }
  0x36   : > { %v706_v1 = vrot.slane %v3117_v31, 7  ;;  %2517 = vmatmul.mubr.msk.bf16.vlgmr.msra.gmra.mrb[0].mxu0 %vm1053_vm4, %v991_v4  ;;  %v851_v15 = vmax.f32 %v803_v56, %v835_v5  ;;  %v898_v18 = vadd.f32 %v3079_v44, %v882_v6  ;;  %v707_v21 = vrot.slane %v3137_v0, 7  ;;  %v3163_v44 = vld [vmem:[%s3766_s5 + $0x10] sm:$0xff]  }
  0x37   : > { %v458_v20 = vand.u32 15, %v402_v7  ;;  %v850_v22 = vmax.f32 %v802_v9, %v760_v48  ;;  %v947_v23 = vadd.f32 %v931_v11, %v899_v61  ;;  %v465_v25 = vand.u32 15, %v403_v13  ;;  %2561 = vmatpush3.bf16.msra.mxu0 %v3098_v60 }
  0x38   : > { %v726_v28 = vsel %vm716_vm0, %v705_v40, %v706_v1  ;;  %v946_v29 = vadd.f32 %v898_v18, %v760_v48  ;;  %v725_v30 = vsel %vm716_vm0, %v706_v1, %v707_v21  ;;  %v740_v32 = vrot.slane %v3137_v0, 1  ;;  %2562 = vmatprep.subr.bf16.mxu0 %v3145_v8 }
  0x39   : > { %vm610_vm9 = vcmp.eq.s32.totalorder %v458_v20, 0  ;;  %v963_v33 = vmul.f32 0.33333334, %v947_v23  ;;  %vm659_vm10 = vcmp.eq.s32.totalorder %v465_v25, 15  ;;  %v741_v35 = vrot.slane %v3139_v2, 1  ;;  %v2453_v23 = vld [vmem:[%s3025_s16 + $0x30] sm:$0xff]  }
  0x3a   : > { %v2262_v34 = vsel %vm610_vm9, 1.0, %v2903_v19  ;;  %v962_v36 = vmul.f32 0.33333334, %v946_v29  ;;  %v2270_v37 = vsel %vm659_vm10, 1.0, %v2903_v19  ;;  %v758_v17 = vsel %vm749_vm1, %v739_v46, %v740_v32  ;;  %v3180_v46 = vld [vmem:[%s3766_s5 + $0x18] sm:$0xff]   ;;  %s3682_s16 = scalar_lea.vmem [#allocation4], %s2251_s28 }
  0x3b   : > { %v772_v38 = vmul.f32 1e+30, %v2262_v34  ;;  %v979_v39 = vadd.f32 %v963_v33, %v851_v15  ;;  %v757_v40 = vsel %vm749_vm1, %v740_v32, %v741_v35  ;;  %v805_v41 = vmax.f32 %v725_v30, %v3137_v0  ;;  %2563 = vmatpush3.bf16.msra.mxu0 %v3145_v8  ;;  %s2126_s25 = sshll.u32 %s3682_s16, 4  ;;  %s2089_s28 = scalar_lea.sflag [#allocation3], %s3678_s23  ;;  %s3697_s25 = int_to_ptr.vmem [resolvable:$true] %s2126_s25 }
  0x3c   : > { %v821_v42 = vmul.f32 1e+30, %v2270_v37  ;;  %v978_v43 = vadd.f32 %v962_v36, %v850_v22  ;;  %v868_v47 = vsub.f32 1.0, %v2262_v34  ;;  %v901_v14 = vadd.f32 %v3137_v0, %v725_v30  ;;  %2564 = vmatprep.subr.bf16.mxu0 %v3163_v44 }
  0x3d   : > { %v788_v45 = vsub.f32 %v726_v28, %v772_v38  ;;  %v917_v49 = vsub.f32 1.0, %v2270_v37  ;;  %v3182_v50 = vunpack.c.h.bf16 %v2451_v52  ;;  %v3184_v51 = vunpack.c.l.bf16 %v2452_v24 }
  0x3e   : > { %v837_v48 = vsub.f32 %v757_v40, %v821_v42  ;;  %v992_v53 = vpack.c.bf16 %v979_v39, %v978_v43  ;;  %v884_v55 = vmul.f32 %v868_v47, %v726_v28  ;;  %v404_v56 = vadd.s32 64, %v3011_v3 }
  0x3f   : > { %v804_v54 = vmax.f32 %v788_v45, %v3117_v31  ;;  %v933_v58 = vmul.f32 %v917_v49, %v757_v40  ;;  %v405_v59 = vadd.s32 72, %v3011_v3  ;;  %v708_v61 = vrot.slane %v3139_v2, 7  ;;  %2565 = vmatpush3.bf16.msra.mxu0 %v3163_v44 }
  0x40   : > { %v853_v57 = vmax.f32 %v805_v41, %v837_v48  ;;  %2520 = vmatprep.mubr.msk.bf16.mxu0 %vm1053_vm4, %v992_v53  ;;  %v900_v62 = vadd.f32 %v3117_v31, %v884_v55  ;;  %v472_v63 = vand.u32 15, %v404_v56  ;;  %v709_v0 = vrot.slane %v3182_v50, 7  ;;  %2566 = vmatprep.subr.bf16.mxu0 %v3180_v46 }
  0x41   : > { %v852_v52 = vmax.f32 %v804_v54, %v758_v17  ;;  %v949_v4 = vadd.f32 %v933_v58, %v901_v14  ;;  %v479_v5 = vand.u32 15, %v405_v59  ;;  %v724_v6 = vsel %vm716_vm0, %v707_v21, %v708_v61 }
  0x42   : > { %v742_v7 = vrot.slane %v3182_v50, 1  ;;  %v948_v9 = vadd.f32 %v900_v62, %v758_v17  ;;  %vm612_vm11 = vcmp.eq.s32.totalorder %v472_v63, 0  ;;  %v723_v11 = vsel %vm716_vm0, %v708_v61, %v709_v0 }
  0x43   : > { %v743_v31 = vrot.slane %v3184_v51, 1  ;;  %v965_v13 = vmul.f32 0.33333334, %v949_v4  ;;  %v2263_v1 = vsel %vm612_vm11, 1.0, %v2903_v19  ;;  %vm661_vm12 = vcmp.eq.s32.totalorder %v479_v5, 15  ;;  %2567 = vmatpush3.bf16.msra.mxu0 %v3180_v46 }
  0x44   : > { %v756_v15 = vsel %vm749_vm1, %v741_v35, %v742_v7  ;;  %v964_v18 = vmul.f32 0.33333334, %v948_v9  ;;  %v2271_v20 = vsel %vm661_vm12, 1.0, %v2903_v19  ;;  %v774_v22 = vmul.f32 1e+30, %v2263_v1 }
  0x45   : > { %v755_v21 = vsel %vm749_vm1, %v742_v7, %v743_v31  ;;  %v981_v25 = vadd.f32 %v965_v13, %v853_v57  ;;  %v807_v28 = vmax.f32 %v723_v11, %v3182_v50  ;;  %v823_v29 = vmul.f32 1e+30, %v2271_v20 }
  0x46   : > { %v870_v30 = vsub.f32 1.0, %v2263_v1  ;;  %v980_v32 = vadd.f32 %v964_v18, %v852_v52  ;;  %v790_v33 = vsub.f32 %v724_v6, %v774_v22  ;;  %v903_v34 = vadd.f32 %v3182_v50, %v723_v11 }
  0x47   : > { %v919_v35 = vsub.f32 1.0, %v2271_v20  ;;  %v839_v36 = vsub.f32 %v755_v21, %v823_v29  ;;  %v3213_v17 = vunpack.c.h.bf16 %v2452_v24  ;;  %v3215_v38 = vunpack.c.l.bf16 %v2453_v23 }
  0x48   : > { %v886_v37 = vmul.f32 %v870_v30, %v724_v6  ;;  %v993_v39 = vpack.c.bf16 %v981_v25, %v980_v32  ;;  %v806_v40 = vmax.f32 %v790_v33, %v3139_v2  ;;  %v406_v42 = vadd.s32 80, %v3011_v3 }
  0x49   : > { %v935_v41 = vmul.f32 %v919_v35, %v755_v21  ;;  %v3220_v43 = vunpack.c.l.bf16 %v3031_v10  ;;  %v407_v47 = vadd.s32 88, %v3011_v3  ;;  %v710_v14 = vrot.slane %v3184_v51, 7 }
  0x4a   : > { %v902_v45 = vadd.f32 %v3139_v2, %v886_v37  ;;  %2521 = vmatmul.mubr.msk.bf16.gmra.mrb[4].mxu0 %vm1053_vm4, %v993_v39  ;;  %v855_v24 = vmax.f32 %v807_v28, %v839_v36  ;;  %v486_v49 = vand.u32 15, %v406_v42  ;;  %v711_v50 = vrot.slane %v3213_v17, 7 }
  0x4b   : > { %v951_v48 = vadd.f32 %v935_v41, %v903_v34  ;;  %v854_v53 = vmax.f32 %v806_v40, %v756_v15  ;;  %v493_v55 = vand.u32 15, %v407_v47  ;;  %v744_v56 = vrot.slane %v3213_v17, 1 }
  0x4c   : > { %v950_v54 = vadd.f32 %v902_v45, %v756_v15  ;;  %vm614_vm13 = vcmp.eq.s32.totalorder %v486_v49, 0  ;;  %v722_v2 = vsel %vm716_vm0, %v709_v0, %v710_v14  ;;  %v745_v57 = vrot.slane %v3215_v38, 1 }
  0x4d   : > { %v967_v10 = vmul.f32 0.33333334, %v951_v48  ;;  %v2264_v59 = vsel %vm614_vm13, 1.0, %v2903_v19  ;;  %vm663_vm14 = vcmp.eq.s32.totalorder %v493_v55, 15  ;;  %v721_v61 = vsel %vm716_vm0, %v710_v14, %v711_v50 }
  0x4e   : > { %v966_v58 = vmul.f32 0.33333334, %v950_v54  ;;  %v2272_v62 = vsel %vm663_vm14, 1.0, %v2903_v19  ;;  %v753_v63 = vsel %vm749_vm1, %v744_v56, %v745_v57  ;;  %v776_v4 = vmul.f32 1e+30, %v2264_v59 }
  0x4f   : > { %v983_v52 = vadd.f32 %v967_v10, %v855_v24  ;;  %v809_v0 = vmax.f32 %v721_v61, %v3213_v17  ;;  %v825_v6 = vmul.f32 1e+30, %v2272_v62  ;;  %v872_v7 = vsub.f32 1.0, %v2264_v59 }
  0x50   : > { %v982_v5 = vadd.f32 %v966_v58, %v854_v53  ;;  %v792_v9 = vsub.f32 %v722_v2, %v776_v4  ;;  %v905_v11 = vadd.f32 %v3213_v17, %v721_v61  ;;  %v921_v13 = vsub.f32 1.0, %v2272_v62 }
  0x51   : > { %v3241_v1 = vunpack.c.h.bf16 %v2453_v23  ;;  %v841_v18 = vsub.f32 %v753_v63, %v825_v6  ;;  %v888_v20 = vmul.f32 %v872_v7, %v722_v2  ;;  %v408_v21 = vadd.s32 96, %v3011_v3 }
  0x52   : > { %v994_v15 = vpack.c.bf16 %v983_v52, %v982_v5  ;;  %v754_v22 = vsel %vm749_vm1, %v743_v31, %v744_v56  ;;  %v808_v25 = vmax.f32 %v792_v9, %v3184_v51  ;;  %v937_v28 = vmul.f32 %v921_v13, %v753_v63 }
  0x53   : > { %v409_v29 = vadd.s32 104, %v3011_v3  ;;  %v904_v23 = vadd.f32 %v3184_v51, %v888_v20  ;;  %v500_v30 = vand.u32 15, %v408_v21  ;;  %v712_v32 = vrot.slane %v3215_v38, 7 }
  0x54   : > { %2524 = vmatprep.mubr.msk.bf16.mxu0 %vm1053_vm4, %v994_v15  ;;  %v713_v33 = vrot.slane %v3241_v1, 7  ;;  %v856_v34 = vmax.f32 %v808_v25, %v754_v22  ;;  %v857_v35 = vmax.f32 %v809_v0, %v841_v18  ;;  %v953_v36 = vadd.f32 %v937_v28, %v905_v11 }
  0x55   : > { %v507_v37 = vand.u32 15, %v409_v29  ;;  %v952_v17 = vadd.f32 %v904_v23, %v754_v22  ;;  %vm616_vm15 = vcmp.eq.s32.totalorder %v500_v30, 0  ;;  %v746_v39 = vrot.slane %v3241_v1, 1 }
  0x56   : > { %v719_v31 = vsel %vm716_vm0, %v712_v32, %v713_v33  ;;  %v969_v40 = vmul.f32 0.33333334, %v953_v36  ;;  %v2265_v41 = vsel %vm616_vm15, 1.0, %v2903_v19  ;;  %v747_v51 = vrot.slane %v3220_v43, 1 }
  0x57   : > { %vm665_vm2 = vcmp.eq.s32.totalorder %v507_v37, 15  ;;  %v968_v42 = vmul.f32 0.33333334, %v952_v17  ;;  %v720_v47 = vsel %vm716_vm0, %v711_v50, %v712_v32  ;;  %v778_v14 = vmul.f32 1e+30, %v2265_v41 }
  0x58   : > { %v2273_v45 = vsel %vm665_vm2, 1.0, %v2903_v19  ;;  %v985_v24 = vadd.f32 %v969_v40, %v857_v35  ;;  %v751_v48 = vsel %vm749_vm1, %v746_v39, %v747_v51  ;;  %v811_v49 = vmax.f32 %v719_v31, %v3241_v1 }
  0x59   : > { %v827_v53 = vmul.f32 1e+30, %v2273_v45  ;;  %v984_v54 = vadd.f32 %v968_v42, %v856_v34  ;;  %v794_v55 = vsub.f32 %v720_v47, %v778_v14  ;;  %v874_v56 = vsub.f32 1.0, %v2265_v41 }
  0x5a   : > { %v907_v10 = vadd.f32 %v3241_v1, %v719_v31  ;;  %v923_v58 = vsub.f32 1.0, %v2273_v45  ;;  %v410_v59 = vadd.s32 112, %v3011_v3  ;;  %v411_v61 = vadd.s32 120, %v3011_v3  ;;  %v2659_v3 = vld [vmem:[%s3764_s3 + $0x20] sm:$0xff]  }
  0x5b   : > { %v843_v2 = vsub.f32 %v751_v48, %v827_v53  ;;  %v995_v50 = vpack.c.bf16 %v985_v24, %v984_v54  ;;  %v810_v52 = vmax.f32 %v794_v55, %v3215_v38  ;;  %v890_v62 = vmul.f32 %v874_v56, %v720_v47  ;;  %2540 = vmatprep.subr.bf16.mxu1 %v2659_v3 }
  0x5c   : > { %v714_v63 = vrot.slane %v3220_v43, 7  ;;  %v752_v4 = vsel %vm749_vm1, %v745_v57, %v746_v39  ;;  %v939_v5 = vmul.f32 %v923_v58, %v751_v48  ;;  %v514_v0 = vand.u32 15, %v410_v59  ;;  %v2662_v48 = vld [vmem:[%s3766_s5 + $0x28] sm:$0xff]   ;;  %2541 = vmatpush3.bf16.msra.mxu1 %v2659_v3  ;;  %v3362_v3 = vld [vmem:[%s3767_s6] ss:$0 sm:$0xff] }
  0x5d   : > { %v521_v6 = vand.u32 15, %v411_v61  ;;  %2525 = vmatmul.mubr.msk.bf16.gmra.mrb[8].mxu0 %vm1053_vm4, %v995_v50  ;;  %v859_v7 = vmax.f32 %v811_v49, %v843_v2  ;;  %v906_v9 = vadd.f32 %v3215_v38, %v890_v62  ;;  %v748_v1 = vrot.slane %v3044_v16, 1  ;;  %v3313_v49 = vld [vmem:[%s3763_s2] ss:$0 sm:$0xff] }
  0x5e   : > { %v717_v11 = vsel %vm716_vm0, %v714_v63, %v715_v26  ;;  %v955_v13 = vadd.f32 %v939_v5, %v907_v10  ;;  %vm618_vm3 = vcmp.eq.s32.totalorder %v514_v0, 0  ;;  %v858_v15 = vmax.f32 %v810_v52, %v752_v4 }
  0x5f   : > { %vm667_vm5 = vcmp.eq.s32.totalorder %v521_v6, 15  ;;  %v954_v57 = vadd.f32 %v906_v9, %v752_v4  ;;  %v2266_v18 = vsel %vm618_vm3, 1.0, %v2903_v19  ;;  %v718_v38 = vsel %vm716_vm0, %v713_v33, %v714_v63 }
  0x60   : > { %v2274_v20 = vsel %vm667_vm5, 1.0, %v2903_v19  ;;  %v971_v21 = vmul.f32 0.33333334, %v955_v13  ;;  %v780_v22 = vmul.f32 1e+30, %v2266_v18  ;;  %v813_v25 = vmax.f32 %v717_v11, %v3044_v16 }
  0x61   : > { %v970_v28 = vmul.f32 0.33333334, %v954_v57  ;;  %v765_v26 = vsel %vm749_vm1, %v748_v1, %v733_v27  ;;  %v829_v29 = vmul.f32 1e+30, %v2274_v20  ;;  %v876_v23 = vsub.f32 1.0, %v2266_v18 }
  0x62   : > { %v987_v30 = vadd.f32 %v971_v21, %v859_v7  ;;  %v796_v32 = vsub.f32 %v718_v38, %v780_v22  ;;  %v909_v34 = vadd.f32 %v3044_v16, %v717_v11  ;;  %v925_v19 = vsub.f32 1.0, %v2274_v20 }
  0x63   : > { %v986_v35 = vadd.f32 %v970_v28, %v858_v15  ;;  %v845_v36 = vsub.f32 %v765_v26, %v829_v29  ;;  %v892_v37 = vmul.f32 %v876_v23, %v718_v38  ;;  %v750_v33 = vsel %vm749_vm1, %v747_v51, %v748_v1  ;;  %v2661_v51 = vld [vmem:[%s3764_s3 + $0x28] sm:$0xff]  }
  0x64   : > { %v812_v17 = vmax.f32 %v796_v32, %v3220_v43  ;;  %v941_v31 = vmul.f32 %v925_v19, %v765_v26  ;;  %2542 = vmatprep.subr.bf16.mxu1 %v2661_v51  ;;  %vm1903_vm0 = vcmask 1041409   ;;  %vm1905_vm1 = vcmask 1042434  }
  0x65   : > { %v996_v12 = vpack.c.bf16 %v987_v30, %v986_v35  ;;  %v861_v39 = vmax.f32 %v813_v25, %v845_v36  ;;  %v908_v27 = vadd.f32 %v3220_v43, %v892_v37  ;;  %v2660_v43 = vld [vmem:[%s3766_s5 + $0x20] sm:$0xff]   ;;  %2543 = vmatpush3.bf16.msra.mxu1 %v2661_v51  ;;  %vm1909_vm6 = vcmask 1044484  }
  0x66   : > { %v957_v40 = vadd.f32 %v941_v31, %v909_v34  ;;  %v860_v41 = vmax.f32 %v812_v17, %v750_v33  ;;  %2568 = vmatprep.subr.bf16.mxu0 %v2660_v43  ;;  %2588 = vmatprep.subr.bf16.mxu1 %v3098_v60  ;;  %vm1911_vm7 = vcmask 1045509   ;;  %vm1913_vm8 = vcmask 1046534  }
  0x67   : > { %2528 = vmatprep.mubr.msk.bf16.mxu0 %vm1053_vm4, %v996_v12  ;;  %v956_v42 = vadd.f32 %v908_v27, %v750_v33  ;;  %2569 = vmatpush3.bf16.msra.mxu0 %v2660_v43  ;;  %vm1915_vm9 = vcmask 1047559  }
  0x68   : > { %v973_v16 = vmul.f32 0.33333334, %v957_v40  ;;  %2570 = vmatprep.subr.bf16.mxu0 %v2662_v48 }
  0x69   : > { %v972_v45 = vmul.f32 0.33333334, %v956_v42 }
  0x6a   : > { %v989_v47 = vadd.f32 %v973_v16, %v861_v39 }
  0x6b   : > { %v988_v14 = vadd.f32 %v972_v45, %v860_v41  ;;  %2571 = vmatpush3.bf16.msra.mxu0 %v2662_v48 }
  0x6d   : > { %v997_v24 = vpack.c.bf16 %v989_v47, %v988_v14  ;;  %v3357_v47 = vld [vmem:[%s3765_s4] ss:$0 sm:$0xff] }
  0x6f   : > { %2529 = vmatmul.mubr.msk.bf16.gmra.mrb[12].mxu0 %vm1053_vm4, %v997_v24 }
 0x109   : > { %v2518_v53 = vpop.f32.mrb[0].mxu0 }
 0x10a   : > { %v1121_v54 = vadd.f32 %v2518_v53, %v3313_v49  ;;  %v1112_v55 = vpop.f32.mrb[1].mxu0 }
 0x10b   : > { %v1113_v56 = vadd.f32 %v3313_v49, %v1112_v55  ;;  %v2519_v10 = vpop.f32.mrb[2].mxu0 }
 0x10c   : > { %v1124_v2 = vadd.f32 %v2519_v10, %v3313_v49  ;;  %v1115_v58 = vpop.f32.mrb[3].mxu0  ;;  %v1177_v61 = vmax.f32 %v1121_v54, 0.0 }
 0x10d   : > { %v1116_v59 = vadd.f32 %v3313_v49, %v1115_v58  ;;  %v1175_v52 = vmax.f32 %v1113_v56, 0.0 }
 0x10e   : > { %v1178_v50 = vmax.f32 %v1124_v2, 0.0 }
 0x10f   : > { %v1176_v62 = vmax.f32 %v1116_v59, 0.0 }
 0x110   : > { %v1192_v63 = vpack.c.bf16 %v1178_v50, %v1177_v61 }
 0x111   : > { %v1191_v4 = vpack.c.bf16 %v1176_v62, %v1175_v52 }
 0x113   : > { %2544 = vmatprep.mubr.msk.bf16.mxu1 %vm1053_vm4, %v1191_v4  ;;  %2572 = vmatprep.mubr.msk.bf16.mxu0 %vm1053_vm4, %v1191_v4 }
 0x114   : > { %2545 = vmatmul.mubr.msk.bf16.vlgmr.msra.gmra.mrb[0].mxu1 %vm1053_vm4, %v1192_v63  ;;  %2573 = vmatmul.mubr.msk.bf16.vlgmr.msra.gmra.mrb[16].mxu0 %vm1053_vm4, %v1192_v63 }
 0x115   : > { %2594 = vmatpush3.bf16.msra.mxu1 %v3098_v60 }
 0x116   : > { %2589 = vmatprep.subr.bf16.mxu1 %v3145_v8 }
 0x119   : > { %2595 = vmatpush3.bf16.msra.mxu1 %v3145_v8 }
 0x11a   : > { %2590 = vmatprep.subr.bf16.mxu1 %v3163_v44 }
 0x11d   : > { %v2522_v5 = vpop.f32.mrb[4].mxu0  ;;  %2596 = vmatpush3.bf16.msra.mxu1 %v3163_v44 }
 0x11e   : > { %v1137_v0 = vadd.f32 %v2522_v5, %v3313_v49  ;;  %v1128_v6 = vpop.f32.mrb[5].mxu0  ;;  %2591 = vmatprep.subr.bf16.mxu1 %v3180_v46 }
 0x11f   : > { %v1129_v7 = vadd.f32 %v3313_v49, %v1128_v6  ;;  %v2523_v9 = vpop.f32.mrb[6].mxu0 }
 0x120   : > { %v1140_v11 = vadd.f32 %v2523_v9, %v3313_v49  ;;  %v1131_v60 = vpop.f32.mrb[7].mxu0  ;;  %v1181_v8 = vmax.f32 %v1137_v0, 0.0 }
 0x121   : > { %v1132_v13 = vadd.f32 %v3313_v49, %v1131_v60  ;;  %2597 = vmatpush3.bf16.msra.mxu1 %v3180_v46  ;;  %v1179_v15 = vmax.f32 %v1129_v7, 0.0 }
 0x122   : > { %v1182_v1 = vmax.f32 %v1140_v11, 0.0  ;;  %2592 = vmatprep.subr.bf16.mxu1 %v2660_v43 }
 0x123   : > { %v1180_v44 = vmax.f32 %v1132_v13, 0.0 }
 0x124   : > { %v1194_v57 = vpack.c.bf16 %v1182_v1, %v1181_v8 }
 0x125   : > { %v1193_v18 = vpack.c.bf16 %v1180_v44, %v1179_v15  ;;  %2598 = vmatpush3.bf16.msra.mxu1 %v2660_v43 }
 0x126   : > { %2593 = vmatprep.subr.bf16.mxu1 %v2662_v48 }
 0x127   : > { %2548 = vmatprep.mubr.msk.bf16.mxu1 %vm1053_vm4, %v1193_v18  ;;  %2576 = vmatprep.mubr.msk.bf16.mxu0 %vm1053_vm4, %v1193_v18 }
 0x128   : > { %2549 = vmatmul.mubr.msk.bf16.gmra.mrb[4].mxu1 %vm1053_vm4, %v1194_v57  ;;  %2577 = vmatmul.mubr.msk.bf16.gmra.mrb[20].mxu0 %vm1053_vm4, %v1194_v57 }
 0x129   : > { %2599 = vmatpush3.bf16.msra.mxu1 %v2662_v48 }
 0x130   : > { %v2526_v20 = vpop.f32.mrb[8].mxu0 }
 0x131   : > { %v1153_v46 = vadd.f32 %v2526_v20, %v3313_v49  ;;  %v1144_v21 = vpop.f32.mrb[9].mxu0 }
 0x132   : > { %v1145_v38 = vadd.f32 %v3313_v49, %v1144_v21  ;;  %v2527_v22 = vpop.f32.mrb[10].mxu0 }
 0x133   : > { %v1156_v25 = vadd.f32 %v2527_v22, %v3313_v49  ;;  %v1147_v28 = vpop.f32.mrb[11].mxu0  ;;  %v1185_v29 = vmax.f32 %v1153_v46, 0.0 }
 0x134   : > { %v1148_v26 = vadd.f32 %v3313_v49, %v1147_v28  ;;  %v1183_v30 = vmax.f32 %v1145_v38, 0.0 }
 0x135   : > { %v1186_v23 = vmax.f32 %v1156_v25, 0.0 }
 0x136   : > { %v1184_v32 = vmax.f32 %v1148_v26, 0.0 }
 0x137   : > { %v1196_v34 = vpack.c.bf16 %v1186_v23, %v1185_v29 }
 0x138   : > { %v1195_v19 = vpack.c.bf16 %v1184_v32, %v1183_v30 }
 0x13a   : > { %2552 = vmatprep.mubr.msk.bf16.mxu1 %vm1053_vm4, %v1195_v19 }
 0x13b   : > { %2553 = vmatmul.mubr.msk.bf16.gmra.mrb[8].mxu1 %vm1053_vm4, %v1196_v34 }
 0x142   : > { %v2530_v35 = vpop.f32.mrb[12].mxu0 }
 0x143   : > { %v1169_v36 = vadd.f32 %v2530_v35, %v3313_v49  ;;  %v1160_v37 = vpop.f32.mrb[13].mxu0 }
 0x144   : > { %v1161_v33 = vadd.f32 %v3313_v49, %v1160_v37  ;;  %v2531_v17 = vpop.f32.mrb[14].mxu0 }
 0x145   : > { %v1172_v31 = vadd.f32 %v2531_v17, %v3313_v49  ;;  %v1163_v12 = vpop.f32.mrb[15].mxu0  ;;  %v1189_v27 = vmax.f32 %v1169_v36, 0.0 }
 0x146   : > { %v1164_v39 = vadd.f32 %v3313_v49, %v1163_v12  ;;  %v1187_v41 = vmax.f32 %v1161_v33, 0.0 }
 0x147   : > { %v1190_v40 = vmax.f32 %v1172_v31, 0.0 }
 0x148   : > { %v1188_v42 = vmax.f32 %v1164_v39, 0.0 }
 0x149   : > { %v1198_v16 = vpack.c.bf16 %v1190_v40, %v1189_v27 }
 0x14a   : > { %v1197_v45 = vpack.c.bf16 %v1188_v42, %v1187_v41 }
 0x14c   : > { %2556 = vmatprep.mubr.msk.bf16.mxu1 %vm1053_vm4, %v1197_v45 }
 0x14d   : > { %2557 = vmatmul.mubr.msk.bf16.gmra.mrb[12].mxu1 %vm1053_vm4, %v1198_v16 }
 0x14e   : > { %2580 = vmatprep.mubr.msk.bf16.mxu1 %vm1053_vm4, %v1195_v19 }
 0x155   : > { %2581 = vmatmul.mubr.msk.bf16.vlgmr.msra.gmra.mrb[16].mxu1 %vm1053_vm4, %v1196_v34 }
 0x156   : > { %2584 = vmatprep.mubr.msk.bf16.mxu1 %vm1053_vm4, %v1197_v45 }
 0x15d   : > { %2585 = vmatmul.mubr.msk.bf16.gmra.mrb[20].mxu1 %vm1053_vm4, %v1198_v16  ;;  %vm1907_vm4 = vcmask 1043459  }
 0x1e7   : > { %v2546_v14 = vpop.f32.mrb[0].mxu1  ;;  %v2574_v24 = vpop.f32.mrb[16].mxu0 }
 0x1e8   : > { %v1312_v43 = vpop.f32.mrb[1].mxu1  ;;  %v1480_v51 = vpop.f32.mrb[17].mxu0  ;;  %v1321_v48 = vadd.f32 %v2546_v14, %v3357_v47  ;;  %v3366_v54 = vadd.f32 %v2574_v24, %v3362_v3 }
 0x1e9   : > { %v2547_v49 = vpop.f32.mrb[2].mxu1  ;;  %v2575_v53 = vpop.f32.mrb[18].mxu0  ;;  %v1313_v58 = vadd.f32 %v3357_v47, %v1312_v43  ;;  %v3374_v59 = vadd.f32 %v3362_v3, %v1480_v51 }
 0x1ea   : > { %v1324_v55 = vadd.f32 %v2547_v49, %v3357_v47  ;;  %v3370_v56 = vadd.f32 %v2575_v53, %v3362_v3  ;;  %v1315_v10 = vpop.f32.mrb[3].mxu1  ;;  %v1483_v2 = vpop.f32.mrb[19].mxu0  ;;  %2663 = vtanh.f32 %v1321_v48  ;;  %v2322_v19 = vmul.f32 -1.442695, %v3366_v54 }
 0x1eb   : > { %v3384_v61 = vadd.f32 %v3362_v3, %v1483_v2  ;;  %v1316_v52 = vadd.f32 %v3357_v47, %v1315_v10  ;;  %v2320_v36 = vmul.f32 -1.442695, %v3374_v59 }
 0x1ec   : > { %v2416_v50 = vpack.c.bf16 %v3370_v56, %v3366_v54  ;;  %2665 = vtanh.f32 %v1324_v55  ;;  %v2323_v17 = vmul.f32 -1.442695, %v3370_v56 }
 0x1ed   : > { %v2411_v62 = vpack.c.bf16 %v3384_v61, %v3374_v59  ;;  %2667 = vtanh.f32 %v1313_v58  ;;  %v2321_v27 = vmul.f32 -1.442695, %v3384_v61 }
 0x1ee   : > { %2455 = vst [vmem:[%s3381_s17 + $0x8] sm:$0xff] %v2416_v50   ;;  %2669 = vtanh.f32 %v1316_v52 }
 0x1ef   : > { %2412 = vst [vmem:[%s3381_s17] sm:$0xff] %v2411_v62  }
 0x1f4   : > { %v2664_v63 = vpop.eup %2663 }
 0x1f6   : > { %v2666_v4 = vpop.eup %2665 }
 0x1f7   : > { %v2668_v5 = vpop.eup %2667  ;;  %v1646_v0 = vmax.f32 %v2664_v63, %v2666_v4 }
 0x1f8   : > { %v2670_v6 = vpop.eup %2669 }
 0x1f9   : > { %v1647_v7 = vrot.slane %v1646_v0, 4  ;;  %v1639_v9 = vmax.f32 %v2668_v5, %v2670_v6 }
 0x1fb   : > { %v2550_v11 = vpop.f32.mrb[4].mxu1  ;;  %v2578_v60 = vpop.f32.mrb[20].mxu0  ;;  %v1648_v1 = vmax.f32 %v1646_v0, %v1647_v7  ;;  %v1640_v15 = vrot.slane %v1639_v9, 4 }
 0x1fc   : > { %v1328_v13 = vpop.f32.mrb[5].mxu1  ;;  %v1496_v8 = vpop.f32.mrb[21].mxu0  ;;  %v1337_v18 = vadd.f32 %v2550_v11, %v3357_v47  ;;  %v3395_v20 = vadd.f32 %v2578_v60, %v3362_v3 }
 0x1fd   : > { %v2551_v44 = vpop.f32.mrb[6].mxu1  ;;  %v2579_v57 = vpop.f32.mrb[22].mxu0  ;;  %v1649_v22 = vrot.slane %v1648_v1, 2  ;;  %v1641_v25 = vmax.f32 %v1639_v9, %v1640_v15  ;;  %v1329_v26 = vadd.f32 %v3357_v47, %v1328_v13  ;;  %v3410_v35 = vadd.f32 %v3362_v3, %v1496_v8 }
 0x1fe   : > { %v3398_v46 = vadd.f32 %v2579_v57, %v3362_v3  ;;  %v1331_v21 = vpop.f32.mrb[7].mxu1  ;;  %v1499_v38 = vpop.f32.mrb[23].mxu0  ;;  %v1340_v28 = vadd.f32 %v2551_v44, %v3357_v47  ;;  %2671 = vtanh.f32 %v1337_v18  ;;  %v2326_v53 = vmul.f32 -1.442695, %v3395_v20 }
 0x1ff   : > { %v1650_v23 = vmax.f32 %v1648_v1, %v1649_v22  ;;  %v1642_v30 = vrot.slane %v1641_v25, 2  ;;  %v1332_v32 = vadd.f32 %v3357_v47, %v1331_v21  ;;  %v3406_v34 = vadd.f32 %v3362_v3, %v1499_v38 }
 0x200   : > { %v2426_v29 = vpack.c.bf16 %v3398_v46, %v3395_v20  ;;  %2673 = vtanh.f32 %v1340_v28  ;;  %v2324_v10 = vmul.f32 -1.442695, %v3410_v35  ;;  %v2327_v15 = vmul.f32 -1.442695, %v3398_v46 }
 0x201   : > { %v1651_v37 = vrot.slane %v1650_v23, 1  ;;  %v1643_v33 = vmax.f32 %v1641_v25, %v1642_v30  ;;  %2675 = vtanh.f32 %v1329_v26  ;;  %v2421_v31 = vpack.c.bf16 %v3406_v34, %v3410_v35 }
 0x202   : > { %2457 = vst [vmem:[%s3381_s17 + $0x18] sm:$0xff] %v2426_v29   ;;  %2677 = vtanh.f32 %v1332_v32 }
 0x203   : > { %v1652_v12 = vmax.f32 %v1650_v23, %v1651_v37  ;;  %v1644_v39 = vrot.slane %v1643_v33, 1  ;;  %2679 = vpow2.f32 %v2322_v19  ;;  %2456 = vst [vmem:[%s3381_s17 + $0x10] sm:$0xff] %v2421_v31  }
 0x204   : > { %2681 = vpow2.f32 %v2320_v36 }
 0x205   : > { %v1697_v40 = vsub.f32 %v2664_v63, %v1652_v12  ;;  %v1698_v41 = vsub.f32 %v2666_v4, %v1652_v12  ;;  %v1645_v42 = vmax.f32 %v1643_v33, %v1644_v39  ;;  %2683 = vpow2.f32 %v2323_v17 }
 0x206   : > { %2685 = vpow2.f32 %v2321_v27 }
 0x207   : > { %v1715_v16 = vmul.f32 1.442695, %v1697_v40  ;;  %v1717_v45 = vmul.f32 1.442695, %v1698_v41  ;;  %v1695_v14 = vsub.f32 %v2668_v5, %v1645_v42  ;;  %v1696_v24 = vsub.f32 %v2670_v6, %v1645_v42 }
 0x208   : > { %v3419_v48 = vpop.eup %2671  ;;  %v2325_v41 = vmul.f32 -1.442695, %v3406_v34 }
 0x209   : > { %2687 = vpow2.f32 %v1715_v16  ;;  %v1711_v43 = vmul.f32 1.442695, %v1695_v14  ;;  %v1713_v51 = vmul.f32 1.442695, %v1696_v24 }
 0x20a   : > { %2689 = vpow2.f32 %v1717_v45  ;;  %v3421_v49 = vpop.eup %2673 }
 0x20b   : > { %2691 = vpow2.f32 %v1711_v43  ;;  %v3424_v55 = vpop.eup %2675  ;;  %v1660_v2 = vmax.f32 %v3419_v48, %v3421_v49 }
 0x20c   : > { %2693 = vpow2.f32 %v1713_v51  ;;  %v3429_v50 = vpop.eup %2677 }
 0x20d   : > { %v2680_v63 = vpop.eup %2679  ;;  %v1661_v4 = vrot.slane %v1660_v2, 4  ;;  %v1653_v5 = vmax.f32 %v3424_v55, %v3429_v50  ;;  %2695 = vpow2.f32 %v2326_v53 }
 0x20e   : > { %v2554_v58 = vpop.f32.mrb[8].mxu1  ;;  %v2682_v7 = vpop.eup %2681  ;;  %2697 = vpow2.f32 %v2324_v10  ;;  %v1593_v22 = vadd.f32 1.0, %v2680_v63 }
 0x20f   : > { %v1353_v52 = vadd.f32 %v2554_v58, %v3357_v47  ;;  %v1344_v62 = vpop.f32.mrb[9].mxu1  ;;  %v2684_v60 = vpop.eup %2683  ;;  %v1662_v13 = vmax.f32 %v1660_v2, %v1661_v4  ;;  %v1654_v8 = vrot.slane %v1653_v5, 4  ;;  %v1591_v29 = vadd.f32 1.0, %v2682_v7 }
 0x210   : > { %v1345_v0 = vadd.f32 %v3357_v47, %v1344_v62  ;;  %v2555_v6 = vpop.f32.mrb[10].mxu1  ;;  %v2686_v44 = vpop.eup %2685  ;;  %v1594_v32 = vadd.f32 1.0, %v2684_v60 }
 0x211   : > { %v1356_v9 = vadd.f32 %v2555_v6, %v3357_v47  ;;  %v1347_v11 = vpop.f32.mrb[11].mxu1  ;;  %2699 = vtanh.f32 %v1353_v52  ;;  %v1663_v57 = vrot.slane %v1662_v13, 2  ;;  %v1655_v18 = vmax.f32 %v1653_v5, %v1654_v8 }
 0x212   : > { %v1348_v1 = vadd.f32 %v3357_v47, %v1347_v11  ;;  %2701 = vtanh.f32 %v1345_v0  ;;  %v1592_v17 = vadd.f32 1.0, %v2686_v44 }
 0x213   : > { %v3438_v21 = vpop.eup %2687  ;;  %2703 = vtanh.f32 %v1356_v9  ;;  %v1664_v25 = vmax.f32 %v1662_v13, %v1663_v57  ;;  %v1656_v28 = vrot.slane %v1655_v18, 2 }
 0x214   : > { %v3440_v38 = vpop.eup %2689  ;;  %2705 = vtanh.f32 %v1348_v1 }
 0x215   : > { %v3442_v26 = vpop.eup %2691  ;;  %v1750_v23 = vadd.f32 %v3440_v38, %v3438_v21  ;;  %2707 = vpow2.f32 %v2327_v15  ;;  %v1665_v19 = vrot.slane %v1664_v25, 1  ;;  %v1657_v36 = vmax.f32 %v1655_v18, %v1656_v28 }
 0x216   : > { %v3446_v30 = vpop.eup %2693  ;;  %2709 = vrcp.f32 %v1593_v22 }
 0x217   : > { %v1751_v37 = vrot.slane %v1750_v23, 4  ;;  %v1743_v33 = vadd.f32 %v3446_v30, %v3442_v26  ;;  %v1666_v31 = vmax.f32 %v1664_v25, %v1665_v19  ;;  %v1658_v12 = vrot.slane %v1657_v36, 1  ;;  %v2696_v39 = vpop.eup %2695 }
 0x218   : > { %2711 = vrcp.f32 %v1591_v29  ;;  %v2698_v42 = vpop.eup %2697  ;;  %v1597_v4 = vadd.f32 1.0, %v2696_v39 }
 0x219   : > { %v1752_v27 = vadd.f32 %v1751_v37, %v1750_v23  ;;  %v1744_v40 = vrot.slane %v1743_v33, 4  ;;  %2713 = vrcp.f32 %v1594_v32  ;;  %v1701_v16 = vsub.f32 %v3419_v48, %v1666_v31 }
 0x21a   : > { %v1702_v45 = vsub.f32 %v3421_v49, %v1666_v31  ;;  %v1659_v14 = vmax.f32 %v1657_v36, %v1658_v12  ;;  %2715 = vrcp.f32 %v1592_v17  ;;  %v1595_v13 = vadd.f32 1.0, %v2698_v42 }
 0x21b   : > { %v3453_v24 = vpop.eup %2699  ;;  %v1753_v43 = vrot.slane %v1752_v27, 2  ;;  %v1745_v51 = vadd.f32 %v1744_v40, %v1743_v33  ;;  %v1723_v10 = vmul.f32 1.442695, %v1701_v16  ;;  %2717 = vpow2.f32 %v2325_v41 }
 0x21c   : > { %v3455_v53 = vpop.eup %2701  ;;  %v1725_v2 = vmul.f32 1.442695, %v1702_v45  ;;  %v1699_v58 = vsub.f32 %v3424_v55, %v1659_v14  ;;  %v1700_v52 = vsub.f32 %v3429_v50, %v1659_v14 }
 0x21d   : > { %v3459_v62 = vpop.eup %2703  ;;  %v1754_v63 = vadd.f32 %v1753_v43, %v1752_v27  ;;  %v1746_v48 = vrot.slane %v1745_v51, 2  ;;  %2719 = vpow2.f32 %v1723_v10 }
 0x21e   : > { %v3461_v49 = vpop.eup %2705  ;;  %v1719_v5 = vmul.f32 1.442695, %v1699_v58  ;;  %v1721_v0 = vmul.f32 1.442695, %v1700_v52  ;;  %v1674_v6 = vmax.f32 %v3453_v24, %v3459_v62  ;;  %2721 = vpow2.f32 %v1725_v2 }
 0x21f   : > { %v2708_v9 = vpop.eup %2707  ;;  %v1755_v11 = vrot.slane %v1754_v63, 1  ;;  %v1747_v55 = vadd.f32 %v1746_v48, %v1745_v51  ;;  %v1667_v50 = vmax.f32 %v3455_v53, %v3461_v49 }
 0x220   : > { %v2558_v7 = vpop.f32.mrb[12].mxu1  ;;  %2723 = vpow2.f32 %v1719_v5  ;;  %v1675_v8 = vrot.slane %v1674_v6, 4  ;;  %v3467_v22 = vpop.eup %2709  ;;  %v1598_v25 = vadd.f32 1.0, %v2708_v9 }
 0x221   : > { %v1360_v60 = vpop.f32.mrb[13].mxu1  ;;  %v1756_v15 = vadd.f32 %v1755_v11, %v1754_v63  ;;  %v1748_v44 = vrot.slane %v1747_v55, 1  ;;  %2725 = vpow2.f32 %v1721_v0  ;;  %v1668_v57 = vrot.slane %v1667_v50, 4 }
 0x222   : > { %v2559_v1 = vpop.f32.mrb[14].mxu1  ;;  %2727 = vrcp.f32 %v1597_v4  ;;  %v1676_v28 = vmax.f32 %v1674_v6, %v1675_v8  ;;  %v3469_v29 = vpop.eup %2711  ;;  %v1369_v19 = vadd.f32 %v2558_v7, %v3357_v47  ;;  %v1361_v12 = vadd.f32 %v3357_v47, %v1360_v60 }
 0x223   : > { %v1363_v18 = vpop.f32.mrb[15].mxu1  ;;  %2729 = vrcp.f32 %v1756_v15  ;;  %v1749_v23 = vadd.f32 %v1748_v44, %v1747_v55  ;;  %v1669_v32 = vmax.f32 %v1667_v50, %v1668_v57  ;;  %v2714_v36 = vpop.eup %2713  ;;  %v1372_v33 = vadd.f32 %v2559_v1, %v3357_v47 }
 0x224   : > { %2731 = vrcp.f32 %v1595_v13  ;;  %v1677_v37 = vrot.slane %v1676_v28, 2  ;;  %v3473_v17 = vpop.eup %2715  ;;  %v1364_v27 = vadd.f32 %v3357_v47, %v1363_v18 }
 0x225   : > { %2733 = vrcp.f32 %v1749_v23  ;;  %v1670_v31 = vrot.slane %v1669_v32, 2  ;;  %v3477_v41 = vpop.eup %2717 }
 0x226   : > { %2735 = vrcp.f32 %v1598_v25  ;;  %v1678_v39 = vmax.f32 %v1676_v28, %v1677_v37 }
 0x227   : > { %v1671_v42 = vmax.f32 %v1669_v32, %v1670_v31  ;;  %2737 = vtanh.f32 %v1369_v19  ;;  %v3482_v14 = vpop.eup %2719 }
 0x228   : > { %v2582_v40 = vpop.f32.mrb[16].mxu1  ;;  %v1679_v43 = vrot.slane %v1678_v39, 1  ;;  %2739 = vtanh.f32 %v1372_v33  ;;  %v3487_v2 = vpop.eup %2721 }
 0x229   : > { %v3480_v16 = vadd.f32 %v2582_v40, %v3362_v3  ;;  %v1512_v45 = vpop.f32.mrb[17].mxu1  ;;  %v1672_v47 = vrot.slane %v1671_v42, 1  ;;  %2741 = vtanh.f32 %v1361_v12  ;;  %v1764_v4 = vadd.f32 %v3487_v2, %v3482_v14 }
 0x22a   : > { %v3485_v51 = vadd.f32 %v3362_v3, %v1512_v45  ;;  %v2583_v10 = vpop.f32.mrb[18].mxu1  ;;  %v3495_v48 = vpop.eup %2723  ;;  %v1680_v5 = vmax.f32 %v1678_v39, %v1679_v43  ;;  %2743 = vtanh.f32 %v1364_v27 }
 0x22b   : > { %v2330_v58 = vmul.f32 -1.442695, %v3480_v16  ;;  %v3491_v52 = vadd.f32 %v2583_v10, %v3362_v3  ;;  %v3493_v63 = vpop.f32.mrb[19].mxu1  ;;  %v3500_v6 = vpop.eup %2725  ;;  %v1673_v7 = vmax.f32 %v1671_v42, %v1672_v47  ;;  %v1765_v50 = vrot.slane %v1764_v4, 4 }
 0x22c   : > { %v2328_v0 = vmul.f32 -1.442695, %v3485_v51  ;;  %v3505_v55 = vpop.eup %2727  ;;  %v1757_v60 = vadd.f32 %v3500_v6, %v3495_v48  ;;  %v1705_v13 = vsub.f32 %v3453_v24, %v1680_v5  ;;  %v1706_v8 = vsub.f32 %v3459_v62, %v1680_v5 }
 0x22d   : > { %2745 = vpow2.f32 %v2330_v58  ;;  %v2331_v9 = vmul.f32 -1.442695, %v3491_v52  ;;  %v2436_v11 = vpack.c.bf16 %v3491_v52, %v3480_v16  ;;  %v2730_v1 = vpop.eup %2729  ;;  %v1703_v15 = vsub.f32 %v3455_v53, %v1673_v7 }
 0x22e   : > { %v1704_v44 = vsub.f32 %v3461_v49, %v1673_v7  ;;  %2747 = vpow2.f32 %v2328_v0  ;;  %v3514_v57 = vpop.eup %2731  ;;  %v1809_v18 = vmul.f32 %v2730_v1, %v3438_v21  ;;  %v1810_v25 = vmul.f32 %v2730_v1, %v3440_v38 }
 0x22f   : > { %2459 = vst [vmem:[%s3381_s17 + $0x28] sm:$0xff] %v2436_v11   ;;  %v1766_v28 = vadd.f32 %v1765_v50, %v1764_v4  ;;  %v1758_v23 = vrot.slane %v1757_v60, 4  ;;  %v2734_v24 = vpop.eup %2733  ;;  %v1731_v19 = vmul.f32 1.442695, %v1705_v13  ;;  %v1733_v62 = vmul.f32 1.442695, %v1706_v8 }
 0x230   : > { %v3518_v32 = vpop.f32.mrb[20].mxu1  ;;  %v1727_v37 = vmul.f32 1.442695, %v1703_v15  ;;  %2749 = vpow2.f32 %v2331_v9  ;;  %v3520_v53 = vpop.eup %2735  ;;  %v1825_v49 = vmul.f32 %v3467_v22, %v1809_v18  ;;  %v1826_v33 = vmul.f32 %v2714_v36, %v1810_v25 }
 0x231   : > { %v1921_v31 = vmul.f32 %v1809_v18, %v3366_v54  ;;  %v1922_v21 = vmul.f32 %v1810_v25, %v3370_v56  ;;  %v3525_v12 = vpop.f32.mrb[21].mxu1  ;;  %v3527_v38 = vpop.eup %2737  ;;  %v1807_v39 = vmul.f32 %v2734_v24, %v3442_v26  ;;  %v1808_v27 = vmul.f32 %v2734_v24, %v3446_v30 }
 0x232   : > { %v1767_v40 = vrot.slane %v1766_v28, 2  ;;  %v1759_v42 = vadd.f32 %v1758_v23, %v1757_v60  ;;  %v3531_v45 = vpop.f32.mrb[22].mxu1  ;;  %v3533_v43 = vpop.eup %2739  ;;  %v1846_v22 = vadd.f32 %v1826_v33, %v1825_v49  ;;  %2751 = vpow2.f32 %v1731_v19 }
 0x233   : > { %v1942_v36 = vadd.f32 %v1922_v21, %v1921_v31  ;;  %v1729_v54 = vmul.f32 1.442695, %v1704_v44  ;;  %v3535_v10 = vpop.f32.mrb[23].mxu1  ;;  %v3537_v56 = vpop.eup %2741  ;;  %v1823_v47 = vmul.f32 %v3469_v29, %v1807_v39  ;;  %v1824_v26 = vmul.f32 %v3473_v17, %v1808_v27 }
 0x234   : > { %v1919_v30 = vmul.f32 %v1807_v39, %v3374_v59  ;;  %v1920_v58 = vmul.f32 %v1808_v27, %v3384_v61  ;;  %v3543_v4 = vpop.eup %2743  ;;  %v1847_v5 = vrot.slane %v1846_v22, 4  ;;  %v1768_v7 = vadd.f32 %v1767_v40, %v1766_v28 }
 0x235   : > { %v1943_v0 = vrot.slane %v1942_v36, 4  ;;  %v1760_v9 = vrot.slane %v1759_v42, 2  ;;  %v1839_v50 = vadd.f32 %v1824_v26, %v1823_v47  ;;  %2753 = vpow2.f32 %v1733_v62 }
 0x236   : > { %v1935_v60 = vadd.f32 %v1920_v58, %v1919_v30  ;;  %v1688_v13 = vmax.f32 %v3527_v38, %v3533_v43  ;;  %v1848_v29 = vadd.f32 %v1847_v5, %v1846_v22  ;;  %v1769_v17 = vrot.slane %v1768_v7, 1 }
 0x237   : > { %v2746_v11 = vpop.eup %2745  ;;  %v1944_v8 = vadd.f32 %v1943_v0, %v1942_v36  ;;  %v1761_v1 = vadd.f32 %v1760_v9, %v1759_v42  ;;  %v1840_v15 = vrot.slane %v1839_v50, 4  ;;  %2755 = vpow2.f32 %v1727_v37 }
 0x238   : > { %v2748_v59 = vpop.eup %2747  ;;  %v1936_v61 = vrot.slane %v1935_v60, 4  ;;  %v1689_v44 = vrot.slane %v1688_v13, 4  ;;  %v1849_v18 = vrot.slane %v1848_v29, 2  ;;  %v1770_v28 = vadd.f32 %v1769_v17, %v1768_v7 }
 0x239   : > { %v1945_v25 = vrot.slane %v1944_v8, 2  ;;  %v1762_v23 = vrot.slane %v1761_v1, 1  ;;  %v1841_v19 = vadd.f32 %v1840_v15, %v1839_v50  ;;  %2757 = vpow2.f32 %v1729_v54 }
 0x23a   : > { %v2750_v24 = vpop.eup %2749  ;;  %v1937_v49 = vadd.f32 %v1936_v61, %v1935_v60  ;;  %v1690_v62 = vmax.f32 %v1688_v13, %v1689_v44  ;;  %2759 = vrcp.f32 %v1770_v28  ;;  %v1596_v31 = vadd.f32 1.0, %v3477_v41 }
 0x23b   : > { %v1946_v33 = vadd.f32 %v1945_v25, %v1944_v8  ;;  %v1763_v21 = vadd.f32 %v1762_v23, %v1761_v1  ;;  %v1842_v39 = vrot.slane %v1841_v19, 2  ;;  %v1681_v37 = vmax.f32 %v3537_v56, %v3543_v4 }
 0x23c   : > { %v1938_v27 = vrot.slane %v1937_v49, 2  ;;  %v1691_v40 = vrot.slane %v1690_v62, 2  ;;  %v3550_v42 = vpop.eup %2751  ;;  %v3552_v22 = vadd.f32 %v1849_v18, %v1848_v29  ;;  %v3556_v54 = vadd.f32 %v3362_v3, %v3493_v63 }
 0x23d   : > { %v1947_v36 = vrot.slane %v1946_v33, 1  ;;  %2761 = vrcp.f32 %v1763_v21  ;;  %v1682_v41 = vrot.slane %v1681_v37, 4  ;;  %v1601_v30 = vadd.f32 1.0, %v2746_v11 }
 0x23e   : > { %v1939_v47 = vadd.f32 %v1938_v27, %v1937_v49  ;;  %v1692_v26 = vmax.f32 %v1690_v62, %v1691_v40  ;;  %v3558_v58 = vadd.f32 %v1842_v39, %v1841_v19  ;;  %2763 = vrcp.f32 %v1596_v31 }
 0x23f   : > { %v1599_v5 = vadd.f32 1.0, %v2748_v59  ;;  %v3560_v0 = vpop.eup %2753  ;;  %v1948_v7 = vadd.f32 %v1947_v36, %v1946_v33  ;;  %v1683_v60 = vmax.f32 %v1681_v37, %v1682_v41  ;;  %v1851_v13 = vrot.slane %v3552_v22, 1 }
 0x240   : > { %v1940_v9 = vrot.slane %v1939_v47, 1  ;;  %v1693_v50 = vrot.slane %v1692_v26, 1  ;;  %v1778_v63 = vadd.f32 %v3560_v0, %v3550_v42  ;;  %v2329_v29 = vmul.f32 -1.442695, %v3556_v54 }
 0x241   : > { %v2431_v11 = vpack.c.bf16 %v3556_v54, %v3485_v51  ;;  %v3568_v8 = vpop.eup %2755  ;;  %v1684_v59 = vrot.slane %v1683_v60, 2  ;;  %2765 = vrcp.f32 %v1601_v30  ;;  %v1844_v15 = vrot.slane %v3558_v58, 1 }
 0x242   : > { %v1941_v17 = vadd.f32 %v1940_v9, %v1939_v47  ;;  %v1694_v1 = vmax.f32 %v1692_v26, %v1693_v50  ;;  %v1779_v61 = vrot.slane %v1778_v63, 4  ;;  %2767 = vrcp.f32 %v1599_v5 }
 0x243   : > { %v3571_v44 = vadd.f32 1.0, %v2750_v24  ;;  %2458 = vst [vmem:[%s3381_s17 + $0x20] sm:$0xff] %v2431_v11   ;;  %v3574_v18 = vpop.eup %2757  ;;  %v1685_v19 = vmax.f32 %v1683_v60, %v1684_v59  ;;  %2769 = vpow2.f32 %v2329_v29  ;;  %v3585_v24 = vadd.f32 %v3518_v32, %v3362_v3 }
 0x244   : > { %v3577_v25 = vsel %vm1903_vm0, %v1948_v7, %v1941_v17  ;;  %v1709_v28 = vsub.f32 %v3527_v38, %v1694_v1  ;;  %v1710_v23 = vsub.f32 %v3533_v43, %v1694_v1  ;;  %v2760_v49 = vpop.eup %2759  ;;  %v1771_v62 = vadd.f32 %v3574_v18, %v3568_v8 }
 0x245   : > { %v1780_v33 = vadd.f32 %v1779_v61, %v1778_v63  ;;  %v1813_v31 = vmul.f32 %v2760_v49, %v3482_v14  ;;  %v1814_v21 = vmul.f32 %v2760_v49, %v3487_v2  ;;  %v1686_v40 = vrot.slane %v1685_v19, 1 }
 0x246   : > { %v1739_v39 = vmul.f32 1.442695, %v1709_v28  ;;  %v1741_v27 = vmul.f32 1.442695, %v1710_v23  ;;  %v1772_v37 = vrot.slane %v1771_v62, 4  ;;  %v3591_v36 = vadd.f32 %v3362_v3, %v3525_v12 }
 0x247   : > { %v2762_v38 = vpop.eup %2761  ;;  %v1781_v43 = vrot.slane %v1780_v33, 2  ;;  %v1829_v47 = vmul.f32 %v3505_v55, %v1813_v31  ;;  %v1830_v26 = vmul.f32 %v3520_v53, %v1814_v21  ;;  %v1925_v32 = vmul.f32 %v1813_v31, %v3395_v20 }
 0x248   : > { %v1926_v14 = vmul.f32 %v1814_v21, %v3398_v46  ;;  %v2764_v41 = vpop.eup %2763  ;;  %v1811_v2 = vmul.f32 %v2762_v38, %v3495_v48  ;;  %v1812_v30 = vmul.f32 %v2762_v38, %v3500_v6  ;;  %2771 = vpow2.f32 %v1739_v39 }
 0x249   : > { %v1687_v5 = vmax.f32 %v1685_v19, %v1686_v40  ;;  %v1860_v7 = vadd.f32 %v1830_v26, %v1829_v47  ;;  %2773 = vpow2.f32 %v1741_v27  ;;  %v1782_v12 = vadd.f32 %v1781_v43, %v1780_v33 }
 0x24a   : > { %v1956_v9 = vadd.f32 %v1926_v14, %v1925_v32  ;;  %v1827_v50 = vmul.f32 %v3514_v57, %v1811_v2  ;;  %v1828_v55 = vmul.f32 %v2764_v41, %v1812_v30  ;;  %v1923_v53 = vmul.f32 %v1811_v2, %v3410_v35 }
 0x24b   : > { %v1924_v20 = vmul.f32 %v1812_v30, %v3406_v34  ;;  %v3602_v60 = vpop.eup %2765  ;;  %v1861_v46 = vrot.slane %v1860_v7, 4  ;;  %v1707_v48 = vsub.f32 %v3537_v56, %v1687_v5  ;;  %v1708_v6 = vsub.f32 %v3543_v4, %v1687_v5 }
 0x24c   : > { %v1957_v63 = vrot.slane %v1956_v9, 4  ;;  %v3606_v29 = vpop.eup %2767  ;;  %v1853_v11 = vadd.f32 %v1828_v55, %v1827_v50  ;;  %v1783_v1 = vrot.slane %v1782_v12, 1  ;;  %v1773_v59 = vadd.f32 %v1772_v37, %v1771_v62 }
 0x24d   : > { %v1949_v17 = vadd.f32 %v1924_v20, %v1923_v53  ;;  %v1862_v57 = vadd.f32 %v1861_v46, %v1860_v7  ;;  %v1735_v28 = vmul.f32 1.442695, %v1707_v48  ;;  %v1737_v35 = vmul.f32 1.442695, %v1708_v6  ;;  %v2770_v23 = vpop.eup %2769 }
 0x24e   : > { %v1958_v61 = vadd.f32 %v1957_v63, %v1956_v9  ;;  %v1854_v34 = vrot.slane %v1853_v11, 4  ;;  %v1784_v49 = vadd.f32 %v1783_v1, %v1782_v12  ;;  %v1774_v33 = vrot.slane %v1773_v59, 2 }
 0x24f   : > { %v1950_v19 = vrot.slane %v1949_v17, 4  ;;  %v1863_v31 = vrot.slane %v1862_v57, 2  ;;  %2775 = vpow2.f32 %v1735_v28  ;;  %v2334_v56 = vmul.f32 -1.442695, %v3585_v24 }
 0x250   : > { %v1959_v21 = vrot.slane %v1958_v61, 2  ;;  %v1855_v4 = vadd.f32 %v1854_v34, %v1853_v11  ;;  %2777 = vpow2.f32 %v1737_v35  ;;  %v1775_v27 = vadd.f32 %v1774_v33, %v1773_v59 }
 0x251   : > { %v1951_v39 = vadd.f32 %v1950_v19, %v1949_v17  ;;  %v1864_v62 = vadd.f32 %v1863_v31, %v1862_v57  ;;  %2779 = vrcp.f32 %v1784_v49  ;;  %v1600_v40 = vadd.f32 1.0, %v2770_v23 }
 0x252   : > { %v1960_v38 = vadd.f32 %v1959_v21, %v1958_v61  ;;  %v3609_v43 = vpop.eup %2771  ;;  %v1856_v37 = vrot.slane %v1855_v4, 2  ;;  %v1776_v26 = vrot.slane %v1775_v27, 1  ;;  %2781 = vrcp.f32 %v3571_v44 }
 0x253   : > { %v1952_v47 = vrot.slane %v1951_v39, 2  ;;  %v3612_v32 = vpop.eup %2773  ;;  %v1852_v14 = vadd.f32 %v1851_v13, %v3552_v22  ;;  %v1845_v41 = vadd.f32 %v1844_v15, %v3558_v58  ;;  %v1865_v2 = vrot.slane %v1864_v62, 1 }
 0x254   : > { %2783 = vpow2.f32 %v2334_v56  ;;  %v1857_v30 = vadd.f32 %v1856_v37, %v1855_v4  ;;  %v1792_v7 = vadd.f32 %v3612_v32, %v3609_v43  ;;  %v1777_v9 = vadd.f32 %v1776_v26, %v1775_v27 }
 0x255   : > { %v1953_v5 = vadd.f32 %v1952_v47, %v1951_v39  ;;  %v1961_v12 = vrot.slane %v1960_v38, 1  ;;  %2785 = vrcp.f32 %v1600_v40  ;;  %v2332_v44 = vmul.f32 -1.442695, %v3591_v36 }
 0x256   : > { %v3625_v50 = vadd.f32 %v3531_v45, %v3362_v3  ;;  %v1858_v22 = vrot.slane %v1857_v30, 1  ;;  %2787 = vrcp.f32 %v1777_v9  ;;  %v1793_v58 = vrot.slane %v1792_v7, 4 }
 0x257   : > { %v1954_v13 = vrot.slane %v1953_v5, 1  ;;  %v3632_v53 = vadd.f32 %v3362_v3, %v3535_v10  ;;  %v1904_v20 = vsel %vm1903_vm0, %v1852_v14, %v1845_v41  ;;  %v1866_v46 = vadd.f32 %v1865_v2, %v1864_v62 }
 0x258   : > { %v2335_v15 = vmul.f32 -1.442695, %v3625_v50  ;;  %v2446_v55 = vpack.c.bf16 %v3625_v50, %v3585_v24  ;;  %v1859_v63 = vadd.f32 %v1858_v22, %v1857_v30  ;;  %v1794_v48 = vadd.f32 %v1793_v58, %v1792_v7 }
 0x259   : > { %v1955_v45 = vadd.f32 %v1954_v13, %v1953_v5  ;;  %v3635_v6 = vpop.eup %2775  ;;  %v1962_v11 = vadd.f32 %v1961_v12, %v1960_v38  ;;  %v2333_v17 = vmul.f32 -1.442695, %v3632_v53  ;;  %v2441_v1 = vpack.c.bf16 %v3632_v53, %v3591_v36 }
 0x25a   : > { %2789 = vpow2.f32 %v2335_v15  ;;  %2461 = vst [vmem:[%s3381_s17 + $0x38] sm:$0xff] %v2446_v55   ;;  %v3641_v59 = vpop.eup %2777  ;;  %v1795_v3 = vrot.slane %v1794_v48, 2  ;;  %v1906_v10 = vsel %vm1905_vm1, %v1859_v63, %v1904_v20 }
 0x25b   : > { %2791 = vpow2.f32 %v2332_v44  ;;  %v2000_v57 = vsel %vm1905_vm1, %v1955_v45, %v3577_v25  ;;  %v2780_v61 = vpop.eup %2779  ;;  %v1785_v28 = vadd.f32 %v3641_v59, %v3635_v6  ;;  %2460 = vst [vmem:[%s3381_s17 + $0x30] sm:$0xff] %v2441_v1   ;;  %v3650_v35 = vsel %vm1907_vm4, %v1866_v46, %v1906_v10  ;;  %s3695_s17 = scalar_lea.hbm %s3769_s8, %s2354_s21 }
 0x25c   : > { %2793 = vpow2.f32 %v2333_v17  ;;  %v3653_v23 = vsel %vm1907_vm4, %v1962_v11, %v2000_v57  ;;  %v2782_v34 = vpop.eup %2781  ;;  %v1817_v19 = vmul.f32 %v2780_v61, %v3550_v42  ;;  %v1818_v49 = vmul.f32 %v2780_v61, %v3560_v0 }
 0x25d   : > { %v1796_v33 = vadd.f32 %v1795_v3, %v1794_v48  ;;  %v1786_v25 = vrot.slane %v1785_v28, 4 }
 0x25e   : > { %v2784_v31 = vpop.eup %2783  ;;  %v1833_v21 = vmul.f32 %v3602_v60, %v1817_v19  ;;  %v1929_v56 = vmul.f32 %v1817_v19, %v3480_v16  ;;  %v1834_v4 = vmul.f32 %v2782_v34, %v1818_v49  ;;  %v1930_v39 = vmul.f32 %v1818_v49, %v3491_v52 }
 0x25f   : > { %v2786_v27 = vpop.eup %2785  ;;  %v1797_v62 = vrot.slane %v1796_v33, 1  ;;  %v1787_v38 = vadd.f32 %v1786_v25, %v1785_v28  ;;  %v1605_v60 = vadd.f32 1.0, %v2784_v31 }
 0x260   : > { %v2788_v40 = vpop.eup %2787  ;;  %v1874_v37 = vadd.f32 %v1834_v4, %v1833_v21  ;;  %v1970_v47 = vadd.f32 %v1930_v39, %v1929_v56 }
 0x261   : > { %v1815_v42 = vmul.f32 %v2788_v40, %v3568_v8  ;;  %v1816_v0 = vmul.f32 %v2788_v40, %v3574_v18  ;;  %v1798_v26 = vadd.f32 %v1797_v62, %v1796_v33  ;;  %v1788_v14 = vrot.slane %v1787_v38, 2 }
 0x262   : > { %v1875_v41 = vrot.slane %v1874_v37, 4  ;;  %v1971_v2 = vrot.slane %v1970_v47, 4 }
 0x263   : > { %v1831_v16 = vmul.f32 %v3606_v29, %v1815_v42  ;;  %v1927_v52 = vmul.f32 %v1815_v42, %v3485_v51  ;;  %v1832_v5 = vmul.f32 %v2786_v27, %v1816_v0  ;;  %v1928_v7 = vmul.f32 %v1816_v0, %v3556_v54 }
 0x264   : > { %v2790_v30 = vpop.eup %2789  ;;  %v1876_v12 = vadd.f32 %v1875_v41, %v1874_v37  ;;  %v1972_v44 = vadd.f32 %v1971_v2, %v1970_v47  ;;  %2795 = vrcp.f32 %v1798_v26  ;;  %v1789_v8 = vadd.f32 %v1788_v14, %v1787_v38 }
 0x265   : > { %v2792_v9 = vpop.eup %2791  ;;  %v1867_v18 = vadd.f32 %v1832_v5, %v1831_v16  ;;  %v1963_v13 = vadd.f32 %v1928_v7, %v1927_v52  ;;  %v1606_v58 = vadd.f32 1.0, %v2790_v30  ;;  %2797 = vrcp.f32 %v1605_v60 }
 0x266   : > { %v2794_v22 = vpop.eup %2793  ;;  %v1877_v15 = vrot.slane %v1876_v12, 2  ;;  %v1973_v55 = vrot.slane %v1972_v44, 2  ;;  %v1790_v20 = vrot.slane %v1789_v8, 1  ;;  %v1603_v63 = vadd.f32 1.0, %v2792_v9 }
 0x267   : > { %v1868_v46 = vrot.slane %v1867_v18, 4  ;;  %v1964_v29 = vrot.slane %v1963_v13, 4  ;;  %2799 = vrcp.f32 %v1606_v58  ;;  %v1604_v45 = vadd.f32 1.0, %v2794_v22 }
 0x268   : > { %v1791_v51 = vadd.f32 %v1790_v20, %v1789_v8  ;;  %v1878_v11 = vadd.f32 %v1877_v15, %v1876_v12  ;;  %v1974_v17 = vadd.f32 %v1973_v55, %v1972_v44 }
 0x269   : > { %v1869_v54 = vadd.f32 %v1868_v46, %v1867_v18  ;;  %v1965_v48 = vadd.f32 %v1964_v29, %v1963_v13 }
 0x26a   : > { %2801 = vrcp.f32 %v1791_v51  ;;  %v1975_v28 = vrot.slane %v1974_v17, 1  ;;  %v1879_v34 = vrot.slane %v1878_v11, 1 }
 0x26b   : > { %v1870_v1 = vrot.slane %v1869_v54, 2  ;;  %v1966_v3 = vrot.slane %v1965_v48, 2  ;;  %2803 = vrcp.f32 %v1603_v63 }
 0x26c   : > { %2805 = vrcp.f32 %v1604_v45  ;;  %v1976_v62 = vadd.f32 %v1975_v28, %v1974_v17  ;;  %v1880_v47 = vadd.f32 %v1879_v34, %v1878_v11 }
 0x26d   : > { %v1871_v10 = vadd.f32 %v1870_v1, %v1869_v54  ;;  %v1967_v57 = vadd.f32 %v1966_v3, %v1965_v48 }
 0x26e   : > { %v2796_v61 = vpop.eup %2795 }
 0x26f   : > { %v1872_v19 = vrot.slane %v1871_v10, 1  ;;  %v1968_v49 = vrot.slane %v1967_v57, 1  ;;  %v1821_v33 = vmul.f32 %v2796_v61, %v3609_v43  ;;  %v1822_v31 = vmul.f32 %v2796_v61, %v3612_v32  ;;  %v2798_v25 = vpop.eup %2797 }
 0x271   : > { %v2800_v21 = vpop.eup %2799  ;;  %v1969_v56 = vadd.f32 %v1968_v49, %v1967_v57  ;;  %v1837_v4 = vmul.f32 %v2798_v25, %v1821_v33  ;;  %v1933_v39 = vmul.f32 %v1821_v33, %v3585_v24  ;;  %v1934_v27 = vmul.f32 %v1822_v31, %v3625_v50 }
 0x272   : > { %v1838_v38 = vmul.f32 %v2800_v21, %v1822_v31  ;;  %v1873_v40 = vadd.f32 %v1872_v19, %v1871_v10 }
 0x273   : > { %v1984_v37 = vadd.f32 %v1934_v27, %v1933_v39  ;;  %v2002_v42 = vsel %vm1909_vm6, %v1969_v56, %v3653_v23 }
 0x274   : > { %v2802_v43 = vpop.eup %2801  ;;  %v1888_v0 = vadd.f32 %v1838_v38, %v1837_v4  ;;  %v1910_v32 = vsel %vm1909_vm6, %v1873_v40, %v3650_v35  ;;  %v2003_v26 = vsel %vm1911_vm7, %v1976_v62, %v2002_v42 }
 0x275   : > { %v2804_v14 = vpop.eup %2803  ;;  %v1819_v41 = vmul.f32 %v2802_v43, %v3635_v6  ;;  %v1985_v2 = vrot.slane %v1984_v37, 4  ;;  %v1820_v24 = vmul.f32 %v2802_v43, %v3641_v59  ;;  %v1912_v50 = vsel %vm1911_vm7, %v1880_v47, %v1910_v32 }
 0x276   : > { %v2806_v60 = vpop.eup %2805  ;;  %v1889_v30 = vrot.slane %v1888_v0, 4 }
 0x277   : > { %v1835_v16 = vmul.f32 %v2804_v14, %v1819_v41  ;;  %v1931_v23 = vmul.f32 %v1819_v41, %v3591_v36  ;;  %v1986_v52 = vadd.f32 %v1985_v2, %v1984_v37  ;;  %v1836_v5 = vmul.f32 %v2806_v60, %v1820_v24 }
 0x278   : > { %v1932_v35 = vmul.f32 %v1820_v24, %v3632_v53  ;;  %v1890_v7 = vadd.f32 %v1889_v30, %v1888_v0 }
 0x279   : > { %v1881_v9 = vadd.f32 %v1836_v5, %v1835_v16  ;;  %v1987_v6 = vrot.slane %v1986_v52, 2 }
 0x27a   : > { %v1977_v12 = vadd.f32 %v1932_v35, %v1931_v23  ;;  %v1891_v44 = vrot.slane %v1890_v7, 2 }
 0x27b   : > { %v1882_v8 = vrot.slane %v1881_v9, 4  ;;  %v1988_v58 = vadd.f32 %v1987_v6, %v1986_v52 }
 0x27c   : > { %v1978_v59 = vrot.slane %v1977_v12, 4  ;;  %v1892_v13 = vadd.f32 %v1891_v44, %v1890_v7 }
 0x27d   : > { %v1883_v22 = vadd.f32 %v1882_v8, %v1881_v9  ;;  %v1989_v29 = vrot.slane %v1988_v58, 1 }
 0x27e   : > { %v1979_v18 = vadd.f32 %v1978_v59, %v1977_v12  ;;  %v1893_v20 = vrot.slane %v1892_v13, 1 }
 0x27f   : > { %v1884_v36 = vrot.slane %v1883_v22, 2  ;;  %v1990_v11 = vadd.f32 %v1989_v29, %v1988_v58 }
 0x280   : > { %v1980_v15 = vrot.slane %v1979_v18, 2  ;;  %v1894_v45 = vadd.f32 %v1893_v20, %v1892_v13 }
 0x281   : > { %v1885_v55 = vadd.f32 %v1884_v36, %v1883_v22 }
 0x282   : > { %v1981_v53 = vadd.f32 %v1980_v15, %v1979_v18 }
 0x283   : > { %v1886_v46 = vrot.slane %v1885_v55, 1 }
 0x284   : > { %v1982_v63 = vrot.slane %v1981_v53, 1 }
 0x285   : > { %v1887_v51 = vadd.f32 %v1886_v46, %v1885_v55 }
 0x286   : > { %v1983_v54 = vadd.f32 %v1982_v63, %v1981_v53 }
 0x287   : > { %v1914_v48 = vsel %vm1913_vm8, %v1887_v51, %v1912_v50 }
 0x288   : > { %v1916_v17 = vsel %vm1915_vm9, %v1894_v45, %v1914_v48  ;;  %v2004_v1 = vsel %vm1913_vm8, %v1983_v54, %v2003_v26 }
 0x289   : > { %1918 = vst [vmem:[%s332_s22] sm:$0xff] %v1916_v17  ;;  %v2005_v3 = vsel %vm1915_vm9, %v1990_v11, %v2004_v1 }
 0x28a   : > { %2820 = shalt.err (!%p2817_p3)
}
 0x28b   : > { %s2821_s21 = scalar_lea.hbm %s3688_s29, 128  ;;  %s2825_s14 = scalar_lea.hbm %s3768_s7, 256 }
 0x28c   : > { %p2822_p4 = scmp.ne.s32.totalorder %s3688_s29, %s2821_s21  ;;  %p2826_p9 = scmp.lt.u32.totalorder %s3688_s29, %s3768_s7 }
 0x28d   : > { %p2827_p10 = scmp.lt.u32.totalorder %s2825_s14, %s2821_s21  ;;  %p2829_p12 = scmp.lt.u32.totalorder %s2821_s21, %s3688_s29 }
 0x28e   : > { %p2823_p7 = pnand %p2822_p4, %p2994_p5 }
 0x28f   : > { %p2828_p11 = por %p2827_p10, %p2826_p9 }
 0x290   : > { %p2824_p8 = pneg %p2823_p7 }
 0x291   : > { %p2830_p13 = por %p2829_p12, %p2828_p11 }
 0x293   : > { %p2831_p0 = pnand %p2830_p13, %p2824_p8 }
 0x295   : > { %2834 = shalt.err (!%p2831_p0)
}
 0x296   : > { %2600 = dma.vmem_to_hbm [thread:$0]  (%p2994_p5), %s3690_s24, 128, %s3688_s29, %s2089_s28   ;;  %2007 = vst [vmem:[%s3682_s16] sm:$0xff] %v2005_v3 }
 0x297   : > { %s2094_s1 = scalar_lea.sflag [#allocation5], %s3678_s23  ;;  %s2835_s26 = scalar_lea.vmem %s3697_s25, 128 }
 0x298   : > { %p2836_p1 = scmp.ne.s32.totalorder %s3697_s25, %s2835_s26  ;;  %s2905_s21 = smov [#allocation4]  }
 0x299   : > { %s2839_s22 = sshll.u32 %s2905_s21, 4  ;;  %s2840_s22 = int_to_ptr.vmem [resolvable:$false] %s2839_s22 }
 0x29a   : > { %p2837_p2 = pnand %p2836_p1, %p2994_p5  ;;  %s2841_s13 = scalar_lea.vmem %s2840_s22, 256 }
 0x29b   : > { %p2842_p4 = scmp.lt.s32.totalorder %s3697_s25, %s2840_s22  ;;  %p2843_p7 = scmp.lt.s32.totalorder %s2841_s13, %s2835_s26 }
 0x29c   : > { %p2838_p3 = pneg %p2837_p2 }
 0x29d   : > { %p2844_p8 = por %p2843_p7, %p2842_p4 }
 0x29f   : > { %p2845_p9 = pnand %p2844_p8, %p2838_p3 }
 0x2a1   : > { %2848 = shalt.err (!%p2845_p9)
}
 0x2a2   : > { %s2849_s23 = scalar_lea.hbm %s3695_s17, 128  ;;  %s2853_s29 = scalar_lea.hbm %s3769_s8, 256 }
 0x2a3   : > { %p2850_p10 = scmp.ne.s32.totalorder %s3695_s17, %s2849_s23  ;;  %p2854_p13 = scmp.lt.u32.totalorder %s3695_s17, %s3769_s8 }
 0x2a4   : > { %p2855_p0 = scmp.lt.u32.totalorder %s2853_s29, %s2849_s23  ;;  %p2857_p2 = scmp.lt.u32.totalorder %s2849_s23, %s3695_s17 }
 0x2a5   : > { %p2851_p11 = pnand %p2850_p10, %p2994_p5 }
 0x2a6   : > { %p2856_p1 = por %p2855_p0, %p2854_p13 }
 0x2a7   : > { %p2852_p12 = pneg %p2851_p11 }
 0x2a8   : > { %p2858_p3 = por %p2857_p2, %p2856_p1 }
 0x2aa   : > { %p2859_p4 = pnand %p2858_p3, %p2852_p12 }
 0x2ac   : > { %2862 = shalt.err (!%p2859_p4)
}
 0x2ad   : > { %2601 = dma.vmem_to_hbm [thread:$0]  (%p2994_p5), %s3697_s25, 128, %s3695_s17, %s2094_s1  }
 0x2ae PF: > { %p2611_p7 = scmp.ge.s32.totalorder %s2901_s12, 2  ;;  %s2142_s27 = sand.u32 1, %s2889_s30  }
 0x2af   : > { %s2143_s0 = scalar_lea.sflag [#allocation3], %s2142_s27 }
 0x2b0   : > { %p2605_p8 = pnand %p2611_p7, %p2998_p6 }
 0x2b2   : > { %2880 = dma.done.wait (!%p2605_p8), %s2143_s0, 128  }
 0x2b3   : > { %2882 = vsyncadd (!%p2605_p8), %s2143_s0, 4294967168  ;;  %s2152_s26 = scalar_lea.sflag [#allocation5], %s2142_s27 }
 0x2b4   : > { %2884 = dma.done.wait (!%p2605_p8), %s2152_s26, 128  }
 0x2b5   : > { %2886 = vsyncadd (!%p2605_p8), %s2152_s26, 4294967168  ;;  %p23_p5 = scmp.ge.s32.totalorder %s2981_s15, 4   ;;  %s3777_s30 = smov %s2893_s10 }
 0x2b6   : > { %s3778_s10 = smov %s2897_s11  ;;  %s3779_s11 = smov %s2992_s18 }
 0x2b7   : > { %s3780_s12 = smov %s2981_s15  ;;  %25 = sbr.rel (!%p23_p5) target bundleno = 8 (0x8), region = 112 }
 0x2be   :  { %2166 = vsyncpa [#allocation3], 1 }
 0x2bf   :  { %2168 = vsyncpa [#allocation3 + $0x1], 1 }
 0x2c0   :  { %2169 = vsyncpa [#allocation5], 1 }
 0x2c1   :  { %2171 = vsyncpa [#allocation5 + $0x1], 1 }

</bundles_post_ra>
